<compile_context>
chip_gen: v7x
topology: tpu7x:2x2x1
jax: 0.10.0
libtpu: 0.0.40
codegen_flags: <defaults>
</compile_context>

<pallas_src>
import numpy as np

import jax
import jax.numpy as jnp
from jax.experimental import pallas as pl
from jax.experimental.pallas import tpu as pltpu

LEAKY_SLOPE = 0.1

# Static shapes implied by BLOCKS below.
B = 2
C_IN, H_IN, W_IN = 4, 16, 16
CP = 8                        # conv input channels padded to 8 (aligned tap stack)
N1 = B * H_IN * W_IN          # 512 stage-1 lanes (batch folded onto lanes)
H2 = W2 = 8                   # after maxpool/2
N2 = B * H2 * W2              # 128 stage-2 lanes
F1, F2, F3 = 8, 16, 16
N_CLASSES = 32

# weight-slab row offsets (bf16 slab, width 128)
_R_W1 = 0                     # conv1 tap weights      (8, 72)
_R_W2 = 8                     # conv2 tap weights      (16, 72)
_R_W3 = 24                    # conv3 1x1 weights      (16, 16)
_R_FC = 40                    # connected weight, 4 sub-grid blocks of (32, 32)
_R_GM = 168                   # GAP masks (transposed) (8, 128)
_R_SP = 176                   # 2x2-pool down-sample select (512, 128)
_ROWS = 688


# --------------------------- network definition -----------------------------
# Synthetic Darknet-style config exercising every block type the reference
# forward() supports for inference.
BLOCKS = [
    {'type': 'net', 'channels': '4'},
    {'type': 'convolutional', 'batch_normalize': '1', 'filters': '8',
     'size': '3', 'stride': '1', 'pad': '1', 'activation': 'leaky'},
    {'type': 'maxpool', 'size': '2', 'stride': '2'},
    {'type': 'convolutional', 'batch_normalize': '1', 'filters': '16',
     'size': '3', 'stride': '1', 'pad': '1', 'activation': 'leaky'},
    {'type': 'convolutional', 'batch_normalize': '1', 'filters': '16',
     'size': '1', 'stride': '1', 'pad': '1', 'activation': 'leaky'},
    {'type': 'shortcut', 'from': '-2', 'activation': 'leaky'},
    {'type': 'reorg', 'stride': '2'},
    {'type': 'maxpool', 'size': '2', 'stride': '1'},
    {'type': 'route', 'layers': '-1,-2'},
    {'type': 'avgpool'},
    {'type': 'connected', 'output': '32', 'activation': 'leaky'},
    {'type': 'softmax'},
]
# TODO(synk): 'region'/'classonly'/'cost' loss blocks are training-only
# (they set self.loss and do not affect the returned tensor); omitted.


# ------------------------------ Pallas kernel --------------------------------

def _net_kernel(x_ref, w_ref, m1_ref, m2_ref, bcol_ref, bfc_ref, o_ref):
    """Entire forward pass for all B images (batch folded onto lanes)."""

    def shift(v, k):
        # y[..., n] = v[..., (n + k) % N]   (pltpu.roll follows jnp.roll:
        # roll(x, s)[n] = x[(n - s) % N], so use s = -k mod N).
        n = v.shape[-1]
        s = (-k) % n
        return v if s == 0 else pltpu.roll(v, s, axis=1)

    def leaky(v):
        return jnp.where(v > 0, v, LEAKY_SLOPE * v)

    def conv3x3(v, w, masks, bias, width):
        # v: (8, N) f32; w: (F, 72) bf16; masks: (9, N) f32 tap validity.
        # Stack the 9 shifted+masked taps along the contraction axis -> 1 dot.
        taps = []
        for t in range(9):
            di, dj = t // 3 - 1, t % 3 - 1
            taps.append(shift(v, di * width + dj) * masks[t:t + 1, :])
        stacked = jnp.concatenate(taps, axis=0).astype(jnp.bfloat16)   # (72, N)
        out = jnp.dot(w, stacked, preferred_element_type=jnp.float32)
        return leaky(out + bias)

    x = x_ref[...]                                   # (8, 512) f32 (4 zero ch)

    # conv1 + BN + leaky : (4,16,16) -> (8,16,16)
    a1 = conv3x3(x, w_ref[_R_W1:_R_W1 + F1, 0:72], m1_ref[...],
                 bcol_ref[0:8, :], W_IN)                               # (8, 512)

    # maxpool 2x2 / stride 2 -> (8, 8, 8); down-sample select via bf16 matmul
    p = jnp.maximum(jnp.maximum(a1, shift(a1, 1)),
                    jnp.maximum(shift(a1, W_IN), shift(a1, W_IN + 1)))
    a1p = jnp.dot(p.astype(jnp.bfloat16), w_ref[_R_SP:_ROWS, :],
                  preferred_element_type=jnp.float32)                  # (8, 128)

    # conv2 + BN + leaky : (8,8,8) -> (16,8,8)
    a2 = conv3x3(a1p, w_ref[_R_W2:_R_W2 + F2, 0:72], m2_ref[0:9, :],
                 bcol_ref[8:24, :], W2)                                # (16, 128)

    # conv3 1x1 + BN + leaky, then shortcut (from = -2) + leaky
    a3 = leaky(jnp.dot(w_ref[_R_W3:_R_W3 + F3, 0:F2], a2.astype(jnp.bfloat16),
                       preferred_element_type=jnp.float32) + bcol_ref[24:40, :])
    act = leaky(a2 + a3)                                               # (16, 128)

    # reorg(2) -> maxpool-stride-1 (replicate pad), evaluated at full 8x8
    # resolution with clamped lane shifts (select, not blend).
    mwb = m2_ref[9:10, :] > 0.5        # +2 shift in j stays in-image
    mhb = m2_ref[10:11, :] > 0.5       # +2 shift in i stays in-image
    actw = jnp.where(mwb, shift(act, 2), act)
    acth = jnp.where(mhb, shift(act, 2 * W2), act)
    acthw = jnp.where(mwb, shift(acth, 2), acth)
    pooled = jnp.maximum(jnp.maximum(act, actw), jnp.maximum(acth, acthw))

    # route-concat + global-avg-pool: per (sub-grid, image) means of all 32
    # routed channels in one A @ B^T dot -> featsT[s*B + b, branch*16 + c].
    y = jnp.concatenate([pooled, act], axis=0).astype(jnp.bfloat16)    # (32, 128)
    featsT = jax.lax.dot_general(
        w_ref[_R_GM:_R_GM + 8, :], y,
        dimension_numbers=(((1,), (1,)), ((), ())),
        preferred_element_type=jnp.float32)                            # (8, 32)

    # connected (128 -> 32) + leaky; fc weight pre-split per sub-grid on host.
    f_bf = featsT.astype(jnp.bfloat16)
    terms = [jnp.dot(f_bf[s * B:(s + 1) * B, :],
                     w_ref[_R_FC + 32 * s:_R_FC + 32 * (s + 1), 0:N_CLASSES],
                     preferred_element_type=jnp.float32)
             for s in range(4)]
    logits = leaky(bfc_ref[...] + (terms[0] + terms[1]) + (terms[2] + terms[3]))

    # softmax over classes (nn.Softmax legacy dim=1 on 2-D input); exact divide.
    mx = jnp.max(logits, axis=-1, keepdims=True)
    e = jnp.exp(logits - mx)
    o_ref[...] = e / jnp.sum(e, axis=-1, keepdims=True)                # (B, 32)


def net_forward(x, fused):
    """x: (B, 4, 16, 16) NCHW float32 -> (B, 32) softmax probabilities."""
    wslab, m1, m2s, bcol, bfc = fused
    b = x.shape[0]
    assert b == B
    # channels on sublanes; (batch, spatial) flattened onto lanes; pad C 4->8.
    x_l = jnp.transpose(x, (1, 0, 2, 3)).reshape(C_IN, b * H_IN * W_IN)
    x_p = jnp.concatenate(
        [x_l, jnp.zeros((CP - C_IN, b * H_IN * W_IN), x_l.dtype)], axis=0)
    # Single grid-less invocation: all operands live fully in VMEM.
    return pl.pallas_call(
        _net_kernel,
        out_shape=jax.ShapeDtypeStruct((b, N_CLASSES), jnp.float32),
    )(x_p, wslab, m1, m2s, bcol, bfc)


# ------------------------------- parameters ----------------------------------

def init_conv_bn(key, cin, cout, k):
    k1, k2, k3, k4, k5 = jax.random.split(key, 5)
    w = 0.1 * jax.random.normal(k1, (cout, cin, k, k), jnp.float32)
    gamma = 1.0 + 0.1 * jax.random.normal(k2, (cout,), jnp.float32)
    beta = 0.1 * jax.random.normal(k3, (cout,), jnp.float32)
    mean = 0.1 * jax.random.normal(k4, (cout,), jnp.float32)
    var = jnp.abs(jax.random.normal(k5, (cout,), jnp.float32)) + 1.0
    scale = gamma / jnp.sqrt(var + 1e-5)          # eval-mode BN folding
    shift = beta - mean * scale
    return {'w': w, 'scale': scale, 'shift': shift}


def build_params(key):
    params = {}
    prev_filters = 3
    out_filters = []
    ind = -2
    for block in BLOCKS:
        ind += 1
        t = block['type']
        if t == 'net':
            prev_filters = int(block['channels'])
            continue
        if t == 'convolutional':
            filters = int(block['filters'])
            ksize = int(block['size'])
            key, sub = jax.random.split(key)
            params[ind] = init_conv_bn(sub, prev_filters, filters, ksize)
            prev_filters = filters
        elif t == 'reorg':
            prev_filters = int(block['stride']) ** 2 * prev_filters
        elif t == 'route':
            layers = [int(i) for i in block['layers'].split(',')]
            layers = [l if l > 0 else l + ind for l in layers]
            prev_filters = sum(out_filters[l] for l in layers)
        elif t == 'connected':
            filters = int(block['output'])
            key, sub = jax.random.split(key)
            kw_, kb_ = jax.random.split(sub)
            params[ind] = {
                'w': 0.1 * jax.random.normal(kw_, (filters, prev_filters),
                                             jnp.float32),
                'b': 0.1 * jax.random.normal(kb_, (filters,), jnp.float32)}
            prev_filters = filters
        out_filters.append(prev_filters)
    return params


# ------------------------- host-side constant tables -------------------------

def fuse_params(params):
    """Fold BN, flatten conv taps, pre-split fc weight, build lane tables."""
    p1, p2, p3, pfc = params[0], params[2], params[3], params[9]

    def fold(p):
        w = np.asarray(p['w'], np.float32)
        s = np.asarray(p['scale'], np.float32)
        return w * s[:, None, None, None], np.asarray(p['shift'], np.float32)

    w1, s1 = fold(p1)                                             # (8,4,3,3)
    w2, s2 = fold(p2)                                             # (16,8,3,3)
    w3 = (np.asarray(p3['w'], np.float32).reshape(F3, F2)
          * np.asarray(p3['scale'], np.float32)[:, None])
    s3 = np.asarray(p3['shift'], np.float32)
    wfc = np.asarray(pfc['w'], np.float32)                        # (32, 128)
    bfc = np.asarray(pfc['b'], np.float32)                        # (32,)

    wslab = np.zeros((_ROWS, 128), np.float32)
    # conv tap weights, columns t*8 + c (input channels zero-padded to 8)
    for t in range(9):
        kh, kw = divmod(t, 3)
        wslab[_R_W1:_R_W1 + F1, t * CP:t * CP + C_IN] = w1[:, :, kh, kw]
        wslab[_R_W2:_R_W2 + F2, t * CP:t * CP + CP] = w2[:, :, kh, kw]
    wslab[_R_W3:_R_W3 + F3, 0:F2] = w3
    # connected weight split per sub-grid s; kernel feature row bc = branch*16+c,
    # branch 0 = maxpool-stride-1(reorg) (route layer -1), 1 = reorg (layer -2);
    # Reorg.forward emits channel order s*C + c (sub-grid-major).
    for s in range(4):
        for bc in range(2 * F3):
            br, c = divmod(bc, F3)
            wslab[_R_FC + 32 * s + bc, 0:N_CLASSES] = wfc[:, br * 64 + s * F3 + c]
    # per-(sub-grid, image) global-average masks (transposed, includes 1/16)
    for s in range(4):
        di, dj = divmod(s, 2)
        for b in range(B):
            for i in range(H2):
                for j in range(W2):
                    if i % 2 == di and j % 2 == dj:
                        wslab[_R_GM + s * B + b,
                              b * H2 * W2 + i * W2 + j] = 1.0 / 16.0
    # 2x2/stride-2 max-pool down-sample selection (block-diagonal per image)
    for b in range(B):
        for i in range(H2):
            for j in range(W2):
                wslab[_R_SP + b * H_IN * W_IN + (2 * i) * W_IN + 2 * j,
                      b * H2 * W2 + i * W2 + j] = 1.0

    def tap_masks(h, w):
        m = np.zeros((9, B * h * w), np.float32)
        for t in range(9):
            di, dj = t // 3 - 1, t % 3 - 1
            for i in range(h):
                for j in range(w):
                    if 0 <= i + di < h and 0 <= j + dj < w:
                        for b in range(B):
                            m[t, b * h * w + i * w + j] = 1.0
        return m

    m1 = tap_masks(H_IN, W_IN)                                    # (9, 512)
    m2s = np.zeros((11, N2), np.float32)
    m2s[0:9] = tap_masks(H2, W2)
    for b in range(B):
        for i in range(H2):
            for j in range(W2):
                n = b * H2 * W2 + i * W2 + j
                m2s[9, n] = 1.0 if j <= W2 - 3 else 0.0   # +2 j-shift in-image
                m2s[10, n] = 1.0 if i <= H2 - 3 else 0.0  # +2 i-shift in-image

    bcol = np.zeros((40, 1), np.float32)
    bcol[0:8, 0] = s1
    bcol[8:24, 0] = s2
    bcol[24:40, 0] = s3

    return (jnp.asarray(wslab, dtype=jnp.bfloat16),
            jnp.asarray(m1), jnp.asarray(m2s),
            jnp.asarray(bcol), jnp.asarray(bfc.reshape(1, N_CLASSES)))


if __name__ == "__main__":
    key = jax.random.PRNGKey(0)
    kx, kp = jax.random.split(key)
    x = jax.random.normal(kx, (B, C_IN, H_IN, W_IN), jnp.float32)   # NCHW
    params = build_params(kp)
    fused = fuse_params(params)

    out = jax.jit(net_forward)(x, fused)
    out = jax.block_until_ready(out)

    assert out.shape == (B, N_CLASSES)
    assert bool(jnp.all(jnp.isfinite(out)))
    # exact-f32 softmax -> rows sum to 1 tightly
    assert bool(jnp.allclose(jnp.sum(out, axis=-1), 1.0, atol=1e-4))
    print("KERNEL_OK")
</pallas_src>

<mosaic_0001>
module attributes {stable_mosaic.version = 11 : i64} {
  func.func @_net_kernel(%arg0: memref<8x512xf32, #tpu.memory_space<vmem>>, %arg1: memref<688x128xbf16, #tpu.memory_space<vmem>>, %arg2: memref<9x512xf32, #tpu.memory_space<vmem>>, %arg3: memref<11x128xf32, #tpu.memory_space<vmem>>, %arg4: memref<40x1xf32, #tpu.memory_space<vmem>>, %arg5: memref<1x32xf32, #tpu.memory_space<vmem>>, %arg6: memref<2x32xf32, #tpu.memory_space<vmem>>) attributes {dimension_semantics = [], scalar_prefetch = 0 : i64, scratch_operands = 0 : i64, tpu.core_type = #tpu.core_type<tc>} {
    %c0 = arith.constant 0 : index
    %c0_0 = arith.constant 0 : index
    %0 = vector.load %arg0[%c0, %c0_0] : memref<8x512xf32, #tpu.memory_space<vmem>>, vector<8x512xf32>
    %c0_1 = arith.constant 0 : index
    %c0_2 = arith.constant 0 : index
    %1 = vector.load %arg1[%c0_1, %c0_2] : memref<688x128xbf16, #tpu.memory_space<vmem>>, vector<8x72xbf16>
    %c0_3 = arith.constant 0 : index
    %c0_4 = arith.constant 0 : index
    %2 = vector.load %arg2[%c0_3, %c0_4] : memref<9x512xf32, #tpu.memory_space<vmem>>, vector<9x512xf32>
    %c0_5 = arith.constant 0 : index
    %c0_6 = arith.constant 0 : index
    %3 = vector.load %arg4[%c0_5, %c0_6] : memref<40x1xf32, #tpu.memory_space<vmem>>, vector<8x1xf32>
    %c17_i32 = arith.constant 17 : i32
    %4 = tpu.dynamic_rotate %0 by %c17_i32 dim 1 : vector<8x512xf32>, i32 -> vector<8x512xf32>
    %5 = vector.extract_strided_slice %2 {offsets = [0, 0], sizes = [1, 512], strides = [1, 1]} : vector<9x512xf32> to vector<1x512xf32>
    %6 = vector.broadcast %5 : vector<1x512xf32> to vector<8x512xf32>
    %7 = arith.mulf %4, %6 : vector<8x512xf32>
    %c16_i32 = arith.constant 16 : i32
    %8 = tpu.dynamic_rotate %0 by %c16_i32 dim 1 : vector<8x512xf32>, i32 -> vector<8x512xf32>
    %9 = vector.extract_strided_slice %2 {offsets = [1, 0], sizes = [1, 512], strides = [1, 1]} : vector<9x512xf32> to vector<1x512xf32>
    %10 = vector.broadcast %9 : vector<1x512xf32> to vector<8x512xf32>
    %11 = arith.mulf %8, %10 : vector<8x512xf32>
    %c15_i32 = arith.constant 15 : i32
    %12 = tpu.dynamic_rotate %0 by %c15_i32 dim 1 : vector<8x512xf32>, i32 -> vector<8x512xf32>
    %13 = vector.extract_strided_slice %2 {offsets = [2, 0], sizes = [1, 512], strides = [1, 1]} : vector<9x512xf32> to vector<1x512xf32>
    %14 = vector.broadcast %13 : vector<1x512xf32> to vector<8x512xf32>
    %15 = arith.mulf %12, %14 : vector<8x512xf32>
    %c1_i32 = arith.constant 1 : i32
    %16 = tpu.dynamic_rotate %0 by %c1_i32 dim 1 : vector<8x512xf32>, i32 -> vector<8x512xf32>
    %17 = vector.extract_strided_slice %2 {offsets = [3, 0], sizes = [1, 512], strides = [1, 1]} : vector<9x512xf32> to vector<1x512xf32>
    %18 = vector.broadcast %17 : vector<1x512xf32> to vector<8x512xf32>
    %19 = arith.mulf %16, %18 : vector<8x512xf32>
    %20 = vector.extract_strided_slice %2 {offsets = [4, 0], sizes = [1, 512], strides = [1, 1]} : vector<9x512xf32> to vector<1x512xf32>
    %21 = vector.broadcast %20 : vector<1x512xf32> to vector<8x512xf32>
    %22 = arith.mulf %0, %21 : vector<8x512xf32>
    %c511_i32 = arith.constant 511 : i32
    %23 = tpu.dynamic_rotate %0 by %c511_i32 dim 1 : vector<8x512xf32>, i32 -> vector<8x512xf32>
    %24 = vector.extract_strided_slice %2 {offsets = [5, 0], sizes = [1, 512], strides = [1, 1]} : vector<9x512xf32> to vector<1x512xf32>
    %25 = vector.broadcast %24 : vector<1x512xf32> to vector<8x512xf32>
    %26 = arith.mulf %23, %25 : vector<8x512xf32>
    %c497_i32 = arith.constant 497 : i32
    %27 = tpu.dynamic_rotate %0 by %c497_i32 dim 1 : vector<8x512xf32>, i32 -> vector<8x512xf32>
    %28 = vector.extract_strided_slice %2 {offsets = [6, 0], sizes = [1, 512], strides = [1, 1]} : vector<9x512xf32> to vector<1x512xf32>
    %29 = vector.broadcast %28 : vector<1x512xf32> to vector<8x512xf32>
    %30 = arith.mulf %27, %29 : vector<8x512xf32>
    %c496_i32 = arith.constant 496 : i32
    %31 = tpu.dynamic_rotate %0 by %c496_i32 dim 1 : vector<8x512xf32>, i32 -> vector<8x512xf32>
    %32 = vector.extract_strided_slice %2 {offsets = [7, 0], sizes = [1, 512], strides = [1, 1]} : vector<9x512xf32> to vector<1x512xf32>
    %33 = vector.broadcast %32 : vector<1x512xf32> to vector<8x512xf32>
    %34 = arith.mulf %31, %33 : vector<8x512xf32>
    %c495_i32 = arith.constant 495 : i32
    %35 = tpu.dynamic_rotate %0 by %c495_i32 dim 1 : vector<8x512xf32>, i32 -> vector<8x512xf32>
    %36 = vector.extract_strided_slice %2 {offsets = [8, 0], sizes = [1, 512], strides = [1, 1]} : vector<9x512xf32> to vector<1x512xf32>
    %37 = vector.broadcast %36 : vector<1x512xf32> to vector<8x512xf32>
    %38 = arith.mulf %35, %37 : vector<8x512xf32>
    %39 = tpu.concatenate %7, %11, %15, %19, %22, %26, %30, %34, %38 in 0 : vector<8x512xf32>, vector<8x512xf32>, vector<8x512xf32>, vector<8x512xf32>, vector<8x512xf32>, vector<8x512xf32>, vector<8x512xf32>, vector<8x512xf32>, vector<8x512xf32> -> vector<72x512xf32>
    %40 = arith.truncf %39 : vector<72x512xf32> to vector<72x512xbf16>
    %cst = arith.constant dense<0.000000e+00> : vector<8x512xf32>
    %41 = tpu.matmul %1, %40, %cst {dimension_numbers = #tpu.dot_dimension_numbers<[1], [0], [0], [1], [0, 0, 1, 1], [], []>} : vector<8x72xbf16>, vector<72x512xbf16>, vector<8x512xf32> -> vector<8x512xf32>
    %42 = vector.broadcast %3 : vector<8x1xf32> to vector<8x512xf32>
    %43 = arith.addf %41, %42 : vector<8x512xf32>
    %cst_7 = arith.constant 0.000000e+00 : f32
    %44 = vector.broadcast %cst_7 : f32 to vector<8x512xf32>
    %45 = arith.cmpf ogt, %43, %44 : vector<8x512xf32>
    %cst_8 = arith.constant 1.000000e-01 : f32
    %46 = vector.broadcast %cst_8 : f32 to vector<8x512xf32>
    %47 = arith.mulf %46, %43 : vector<8x512xf32>
    %48 = arith.select %45, %43, %47 : vector<8x512xi1>, vector<8x512xf32>
    %c511_i32_9 = arith.constant 511 : i32
    %49 = tpu.dynamic_rotate %48 by %c511_i32_9 dim 1 : vector<8x512xf32>, i32 -> vector<8x512xf32>
    %50 = arith.maximumf %48, %49 : vector<8x512xf32>
    %c496_i32_10 = arith.constant 496 : i32
    %51 = tpu.dynamic_rotate %48 by %c496_i32_10 dim 1 : vector<8x512xf32>, i32 -> vector<8x512xf32>
    %c495_i32_11 = arith.constant 495 : i32
    %52 = tpu.dynamic_rotate %48 by %c495_i32_11 dim 1 : vector<8x512xf32>, i32 -> vector<8x512xf32>
    %53 = arith.maximumf %51, %52 : vector<8x512xf32>
    %54 = arith.maximumf %50, %53 : vector<8x512xf32>
    %55 = arith.truncf %54 : vector<8x512xf32> to vector<8x512xbf16>
    %c176 = arith.constant 176 : index
    %c0_12 = arith.constant 0 : index
    %56 = vector.load %arg1[%c176, %c0_12] : memref<688x128xbf16, #tpu.memory_space<vmem>>, vector<512x128xbf16>
    %cst_13 = arith.constant dense<0.000000e+00> : vector<8x128xf32>
    %57 = tpu.matmul %55, %56, %cst_13 {dimension_numbers = #tpu.dot_dimension_numbers<[1], [0], [0], [1], [0, 0, 1, 1], [], []>} : vector<8x512xbf16>, vector<512x128xbf16>, vector<8x128xf32> -> vector<8x128xf32>
    %c8 = arith.constant 8 : index
    %c0_14 = arith.constant 0 : index
    %58 = vector.load %arg1[%c8, %c0_14] : memref<688x128xbf16, #tpu.memory_space<vmem>>, vector<16x72xbf16>
    %c0_15 = arith.constant 0 : index
    %c0_16 = arith.constant 0 : index
    %59 = vector.load %arg3[%c0_15, %c0_16] : memref<11x128xf32, #tpu.memory_space<vmem>>, vector<9x128xf32>
    %c8_17 = arith.constant 8 : index
    %c0_18 = arith.constant 0 : index
    %60 = vector.load %arg4[%c8_17, %c0_18] : memref<40x1xf32, #tpu.memory_space<vmem>>, vector<16x1xf32>
    %c9_i32 = arith.constant 9 : i32
    %61 = tpu.dynamic_rotate %57 by %c9_i32 dim 1 : vector<8x128xf32>, i32 -> vector<8x128xf32>
    %62 = vector.extract_strided_slice %59 {offsets = [0, 0], sizes = [1, 128], strides = [1, 1]} : vector<9x128xf32> to vector<1x128xf32>
    %63 = vector.broadcast %62 : vector<1x128xf32> to vector<8x128xf32>
    %64 = arith.mulf %61, %63 : vector<8x128xf32>
    %c8_i32 = arith.constant 8 : i32
    %65 = tpu.dynamic_rotate %57 by %c8_i32 dim 1 : vector<8x128xf32>, i32 -> vector<8x128xf32>
    %66 = vector.extract_strided_slice %59 {offsets = [1, 0], sizes = [1, 128], strides = [1, 1]} : vector<9x128xf32> to vector<1x128xf32>
    %67 = vector.broadcast %66 : vector<1x128xf32> to vector<8x128xf32>
    %68 = arith.mulf %65, %67 : vector<8x128xf32>
    %c7_i32 = arith.constant 7 : i32
    %69 = tpu.dynamic_rotate %57 by %c7_i32 dim 1 : vector<8x128xf32>, i32 -> vector<8x128xf32>
    %70 = vector.extract_strided_slice %59 {offsets = [2, 0], sizes = [1, 128], strides = [1, 1]} : vector<9x128xf32> to vector<1x128xf32>
    %71 = vector.broadcast %70 : vector<1x128xf32> to vector<8x128xf32>
    %72 = arith.mulf %69, %71 : vector<8x128xf32>
    %c1_i32_19 = arith.constant 1 : i32
    %73 = tpu.dynamic_rotate %57 by %c1_i32_19 dim 1 : vector<8x128xf32>, i32 -> vector<8x128xf32>
    %74 = vector.extract_strided_slice %59 {offsets = [3, 0], sizes = [1, 128], strides = [1, 1]} : vector<9x128xf32> to vector<1x128xf32>
    %75 = vector.broadcast %74 : vector<1x128xf32> to vector<8x128xf32>
    %76 = arith.mulf %73, %75 : vector<8x128xf32>
    %77 = vector.extract_strided_slice %59 {offsets = [4, 0], sizes = [1, 128], strides = [1, 1]} : vector<9x128xf32> to vector<1x128xf32>
    %78 = vector.broadcast %77 : vector<1x128xf32> to vector<8x128xf32>
    %79 = arith.mulf %57, %78 : vector<8x128xf32>
    %c127_i32 = arith.constant 127 : i32
    %80 = tpu.dynamic_rotate %57 by %c127_i32 dim 1 : vector<8x128xf32>, i32 -> vector<8x128xf32>
    %81 = vector.extract_strided_slice %59 {offsets = [5, 0], sizes = [1, 128], strides = [1, 1]} : vector<9x128xf32> to vector<1x128xf32>
    %82 = vector.broadcast %81 : vector<1x128xf32> to vector<8x128xf32>
    %83 = arith.mulf %80, %82 : vector<8x128xf32>
    %c121_i32 = arith.constant 121 : i32
    %84 = tpu.dynamic_rotate %57 by %c121_i32 dim 1 : vector<8x128xf32>, i32 -> vector<8x128xf32>
    %85 = vector.extract_strided_slice %59 {offsets = [6, 0], sizes = [1, 128], strides = [1, 1]} : vector<9x128xf32> to vector<1x128xf32>
    %86 = vector.broadcast %85 : vector<1x128xf32> to vector<8x128xf32>
    %87 = arith.mulf %84, %86 : vector<8x128xf32>
    %c120_i32 = arith.constant 120 : i32
    %88 = tpu.dynamic_rotate %57 by %c120_i32 dim 1 : vector<8x128xf32>, i32 -> vector<8x128xf32>
    %89 = vector.extract_strided_slice %59 {offsets = [7, 0], sizes = [1, 128], strides = [1, 1]} : vector<9x128xf32> to vector<1x128xf32>
    %90 = vector.broadcast %89 : vector<1x128xf32> to vector<8x128xf32>
    %91 = arith.mulf %88, %90 : vector<8x128xf32>
    %c119_i32 = arith.constant 119 : i32
    %92 = tpu.dynamic_rotate %57 by %c119_i32 dim 1 : vector<8x128xf32>, i32 -> vector<8x128xf32>
    %93 = vector.extract_strided_slice %59 {offsets = [8, 0], sizes = [1, 128], strides = [1, 1]} : vector<9x128xf32> to vector<1x128xf32>
    %94 = vector.broadcast %93 : vector<1x128xf32> to vector<8x128xf32>
    %95 = arith.mulf %92, %94 : vector<8x128xf32>
    %96 = tpu.concatenate %64, %68, %72, %76, %79, %83, %87, %91, %95 in 0 : vector<8x128xf32>, vector<8x128xf32>, vector<8x128xf32>, vector<8x128xf32>, vector<8x128xf32>, vector<8x128xf32>, vector<8x128xf32>, vector<8x128xf32>, vector<8x128xf32> -> vector<72x128xf32>
    %97 = arith.truncf %96 : vector<72x128xf32> to vector<72x128xbf16>
    %cst_20 = arith.constant dense<0.000000e+00> : vector<16x128xf32>
    %98 = tpu.matmul %58, %97, %cst_20 {dimension_numbers = #tpu.dot_dimension_numbers<[1], [0], [0], [1], [0, 0, 1, 1], [], []>} : vector<16x72xbf16>, vector<72x128xbf16>, vector<16x128xf32> -> vector<16x128xf32>
    %99 = vector.broadcast %60 : vector<16x1xf32> to vector<16x128xf32>
    %100 = arith.addf %98, %99 : vector<16x128xf32>
    %cst_21 = arith.constant 0.000000e+00 : f32
    %101 = vector.broadcast %cst_21 : f32 to vector<16x128xf32>
    %102 = arith.cmpf ogt, %100, %101 : vector<16x128xf32>
    %cst_22 = arith.constant 1.000000e-01 : f32
    %103 = vector.broadcast %cst_22 : f32 to vector<16x128xf32>
    %104 = arith.mulf %103, %100 : vector<16x128xf32>
    %105 = arith.select %102, %100, %104 : vector<16x128xi1>, vector<16x128xf32>
    %c24 = arith.constant 24 : index
    %c0_23 = arith.constant 0 : index
    %106 = vector.load %arg1[%c24, %c0_23] : memref<688x128xbf16, #tpu.memory_space<vmem>>, vector<16x16xbf16>
    %107 = arith.truncf %105 : vector<16x128xf32> to vector<16x128xbf16>
    %cst_24 = arith.constant dense<0.000000e+00> : vector<16x128xf32>
    %108 = tpu.matmul %106, %107, %cst_24 {dimension_numbers = #tpu.dot_dimension_numbers<[1], [0], [0], [1], [0, 0, 1, 1], [], []>} : vector<16x16xbf16>, vector<16x128xbf16>, vector<16x128xf32> -> vector<16x128xf32>
    %c24_25 = arith.constant 24 : index
    %c0_26 = arith.constant 0 : index
    %109 = vector.load %arg4[%c24_25, %c0_26] : memref<40x1xf32, #tpu.memory_space<vmem>>, vector<16x1xf32>
    %110 = vector.broadcast %109 : vector<16x1xf32> to vector<16x128xf32>
    %111 = arith.addf %108, %110 : vector<16x128xf32>
    %cst_27 = arith.constant 0.000000e+00 : f32
    %112 = vector.broadcast %cst_27 : f32 to vector<16x128xf32>
    %113 = arith.cmpf ogt, %111, %112 : vector<16x128xf32>
    %cst_28 = arith.constant 1.000000e-01 : f32
    %114 = vector.broadcast %cst_28 : f32 to vector<16x128xf32>
    %115 = arith.mulf %114, %111 : vector<16x128xf32>
    %116 = arith.select %113, %111, %115 : vector<16x128xi1>, vector<16x128xf32>
    %117 = arith.addf %105, %116 : vector<16x128xf32>
    %cst_29 = arith.constant 0.000000e+00 : f32
    %118 = vector.broadcast %cst_29 : f32 to vector<16x128xf32>
    %119 = arith.cmpf ogt, %117, %118 : vector<16x128xf32>
    %cst_30 = arith.constant 1.000000e-01 : f32
    %120 = vector.broadcast %cst_30 : f32 to vector<16x128xf32>
    %121 = arith.mulf %120, %117 : vector<16x128xf32>
    %122 = arith.select %119, %117, %121 : vector<16x128xi1>, vector<16x128xf32>
    %c9 = arith.constant 9 : index
    %c0_31 = arith.constant 0 : index
    %123 = vector.load %arg3[%c9, %c0_31] : memref<11x128xf32, #tpu.memory_space<vmem>>, vector<1x128xf32>
    %cst_32 = arith.constant 5.000000e-01 : f32
    %124 = vector.broadcast %cst_32 : f32 to vector<1x128xf32>
    %125 = arith.cmpf ogt, %123, %124 : vector<1x128xf32>
    %c10 = arith.constant 10 : index
    %c0_33 = arith.constant 0 : index
    %126 = vector.load %arg3[%c10, %c0_33] : memref<11x128xf32, #tpu.memory_space<vmem>>, vector<1x128xf32>
    %cst_34 = arith.constant 5.000000e-01 : f32
    %127 = vector.broadcast %cst_34 : f32 to vector<1x128xf32>
    %128 = arith.cmpf ogt, %126, %127 : vector<1x128xf32>
    %c126_i32 = arith.constant 126 : i32
    %129 = tpu.dynamic_rotate %122 by %c126_i32 dim 1 : vector<16x128xf32>, i32 -> vector<16x128xf32>
    %130 = vector.shape_cast %125 : vector<1x128xi1> to vector<1x128xi1>
    %131 = vector.broadcast %130 : vector<1x128xi1> to vector<16x128xi1>
    %132 = arith.select %131, %129, %122 : vector<16x128xi1>, vector<16x128xf32>
    %c112_i32 = arith.constant 112 : i32
    %133 = tpu.dynamic_rotate %122 by %c112_i32 dim 1 : vector<16x128xf32>, i32 -> vector<16x128xf32>
    %134 = vector.shape_cast %128 : vector<1x128xi1> to vector<1x128xi1>
    %135 = vector.broadcast %134 : vector<1x128xi1> to vector<16x128xi1>
    %136 = arith.select %135, %133, %122 : vector<16x128xi1>, vector<16x128xf32>
    %c126_i32_35 = arith.constant 126 : i32
    %137 = tpu.dynamic_rotate %136 by %c126_i32_35 dim 1 : vector<16x128xf32>, i32 -> vector<16x128xf32>
    %138 = vector.shape_cast %125 : vector<1x128xi1> to vector<1x128xi1>
    %139 = vector.broadcast %138 : vector<1x128xi1> to vector<16x128xi1>
    %140 = arith.select %139, %137, %136 : vector<16x128xi1>, vector<16x128xf32>
    %141 = arith.maximumf %122, %132 : vector<16x128xf32>
    %142 = arith.maximumf %136, %140 : vector<16x128xf32>
    %143 = arith.maximumf %141, %142 : vector<16x128xf32>
    %144 = tpu.concatenate %143, %122 in 0 : vector<16x128xf32>, vector<16x128xf32> -> vector<32x128xf32>
    %145 = arith.truncf %144 : vector<32x128xf32> to vector<32x128xbf16>
    %c168 = arith.constant 168 : index
    %c0_36 = arith.constant 0 : index
    %146 = vector.load %arg1[%c168, %c0_36] : memref<688x128xbf16, #tpu.memory_space<vmem>>, vector<8x128xbf16>
    %cst_37 = arith.constant dense<0.000000e+00> : vector<8x32xf32>
    %147 = tpu.matmul %146, %145, %cst_37 {dimension_numbers = #tpu.dot_dimension_numbers<[1], [1], [0], [0], [0, 0, 1, 0], [], []>} : vector<8x128xbf16>, vector<32x128xbf16>, vector<8x32xf32> -> vector<8x32xf32>
    %148 = arith.truncf %147 : vector<8x32xf32> to vector<8x32xbf16>
    %149 = vector.extract_strided_slice %148 {offsets = [0, 0], sizes = [2, 32], strides = [1, 1]} : vector<8x32xbf16> to vector<2x32xbf16>
    %c40 = arith.constant 40 : index
    %c0_38 = arith.constant 0 : index
    %150 = vector.load %arg1[%c40, %c0_38] : memref<688x128xbf16, #tpu.memory_space<vmem>>, vector<32x32xbf16>
    %cst_39 = arith.constant dense<0.000000e+00> : vector<2x32xf32>
    %151 = tpu.matmul %149, %150, %cst_39 {dimension_numbers = #tpu.dot_dimension_numbers<[1], [0], [0], [1], [0, 0, 1, 1], [], []>} : vector<2x32xbf16>, vector<32x32xbf16>, vector<2x32xf32> -> vector<2x32xf32>
    %152 = vector.extract_strided_slice %148 {offsets = [2, 0], sizes = [2, 32], strides = [1, 1]} : vector<8x32xbf16> to vector<2x32xbf16>
    %c72 = arith.constant 72 : index
    %c0_40 = arith.constant 0 : index
    %153 = vector.load %arg1[%c72, %c0_40] : memref<688x128xbf16, #tpu.memory_space<vmem>>, vector<32x32xbf16>
    %cst_41 = arith.constant dense<0.000000e+00> : vector<2x32xf32>
    %154 = tpu.matmul %152, %153, %cst_41 {dimension_numbers = #tpu.dot_dimension_numbers<[1], [0], [0], [1], [0, 0, 1, 1], [], []>} : vector<2x32xbf16>, vector<32x32xbf16>, vector<2x32xf32> -> vector<2x32xf32>
    %155 = vector.extract_strided_slice %148 {offsets = [4, 0], sizes = [2, 32], strides = [1, 1]} : vector<8x32xbf16> to vector<2x32xbf16>
    %c104 = arith.constant 104 : index
    %c0_42 = arith.constant 0 : index
    %156 = vector.load %arg1[%c104, %c0_42] : memref<688x128xbf16, #tpu.memory_space<vmem>>, vector<32x32xbf16>
    %cst_43 = arith.constant dense<0.000000e+00> : vector<2x32xf32>
    %157 = tpu.matmul %155, %156, %cst_43 {dimension_numbers = #tpu.dot_dimension_numbers<[1], [0], [0], [1], [0, 0, 1, 1], [], []>} : vector<2x32xbf16>, vector<32x32xbf16>, vector<2x32xf32> -> vector<2x32xf32>
    %158 = vector.extract_strided_slice %148 {offsets = [6, 0], sizes = [2, 32], strides = [1, 1]} : vector<8x32xbf16> to vector<2x32xbf16>
    %c136 = arith.constant 136 : index
    %c0_44 = arith.constant 0 : index
    %159 = vector.load %arg1[%c136, %c0_44] : memref<688x128xbf16, #tpu.memory_space<vmem>>, vector<32x32xbf16>
    %cst_45 = arith.constant dense<0.000000e+00> : vector<2x32xf32>
    %160 = tpu.matmul %158, %159, %cst_45 {dimension_numbers = #tpu.dot_dimension_numbers<[1], [0], [0], [1], [0, 0, 1, 1], [], []>} : vector<2x32xbf16>, vector<32x32xbf16>, vector<2x32xf32> -> vector<2x32xf32>
    %c0_46 = arith.constant 0 : index
    %c0_47 = arith.constant 0 : index
    %161 = vector.load %arg5[%c0_46, %c0_47] : memref<1x32xf32, #tpu.memory_space<vmem>>, vector<1x32xf32>
    %162 = arith.addf %151, %154 : vector<2x32xf32>
    %163 = vector.broadcast %161 : vector<1x32xf32> to vector<2x32xf32>
    %164 = arith.addf %163, %162 : vector<2x32xf32>
    %165 = arith.addf %157, %160 : vector<2x32xf32>
    %166 = arith.addf %164, %165 : vector<2x32xf32>
    %cst_48 = arith.constant 0.000000e+00 : f32
    %167 = vector.broadcast %cst_48 : f32 to vector<2x32xf32>
    %168 = arith.cmpf ogt, %166, %167 : vector<2x32xf32>
    %cst_49 = arith.constant 1.000000e-01 : f32
    %169 = vector.broadcast %cst_49 : f32 to vector<2x32xf32>
    %170 = arith.mulf %169, %166 : vector<2x32xf32>
    %171 = arith.select %168, %166, %170 : vector<2x32xi1>, vector<2x32xf32>
    %cst_50 = arith.constant dense<0xFF800000> : vector<2xf32>
    %172 = vector.multi_reduction <maximumf>, %171, %cst_50 [1] : vector<2x32xf32> to vector<2xf32>
    %173 = vector.shape_cast %172 : vector<2xf32> to vector<2x1xf32>
    %174 = vector.broadcast %173 : vector<2x1xf32> to vector<2x32xf32>
    %175 = arith.subf %171, %174 : vector<2x32xf32>
    %176 = math.exp %175 : vector<2x32xf32>
    %cst_51 = arith.constant dense<0.000000e+00> : vector<2xf32>
    %177 = vector.multi_reduction <add>, %176, %cst_51 [1] : vector<2x32xf32> to vector<2xf32>
    %178 = vector.shape_cast %177 : vector<2xf32> to vector<2x1xf32>
    %179 = vector.broadcast %178 : vector<2x1xf32> to vector<2x32xf32>
    %180 = arith.divf %176, %179 : vector<2x32xf32>
    %c0_52 = arith.constant 0 : index
    %c0_53 = arith.constant 0 : index
    %181 = vector.load %arg6[%c0_52, %c0_53] : memref<2x32xf32, #tpu.memory_space<vmem>>, vector<2x32xf32>
    tpu.vector_store %arg6[%c0_52, %c0_53], %180 {strides = array<i32>} : memref<2x32xf32, #tpu.memory_space<vmem>>, vector<2x32xf32>,
    return
  }
}

</mosaic_0001>

<bundles_post_ra>
// kernel: net_forward.1
= control target key start
LH: loop header
LB: loop body
LE: loop exit
PB: predicated region body
PF: predicated region fallthrough
CT: control target
= control target key end

     0   :  { %s1766_s23 = smov 16   ;;  %s1767_s24 = smov 17   ;;  %s2446_s0 = inlined_call_operand.vmem [shape: f32[8,512], index: 0, kind: input, shape index: {}]   ;;  %s2447_s1 = inlined_call_operand.vmem [shape: bf16[688,128], index: 1, kind: input, shape index: {}]   ;;  %s2448_s2 = inlined_call_operand.vmem [shape: f32[9,512], index: 2, kind: input, shape index: {}]   ;;  %s2449_s3 = inlined_call_operand.vmem [shape: f32[11,128], index: 3, kind: input, shape index: {}]   ;;  %s2450_s4 = inlined_call_operand.vmem [shape: f32[40,1], index: 4, kind: input, shape index: {}]   ;;  %s2451_s5 = inlined_call_operand.vmem [shape: f32[1,32], index: 5, kind: input, shape index: {}]   ;;  %s2452_s6 = inlined_call_operand.hbm [shape: f32[2,32], index: 6, kind: output, shape index: {}]  }
   0x1   :  { %v1823_v0 = vld [vmem:[%s2446_s0] sm:$0xff]  ;;  %v1832_v1 = vld [vmem:[%s2446_s0 + $0x8] sm:$0xff]  ;;  %v1841_v2 = vld [vmem:[%s2446_s0 + $0x18] sm:$0xff]  ;;  %s1768_s29 = smov 15   ;;  %s1769_s30 = smov 1  }
   0x2   :  { %74 = vrot.lane.b32.xlu1 %v1823_v0, %s1766_s23  ;;  %39 = vrot.lane.b32.xlu0 %v1823_v0, %s1767_s24  ;;  %v1858_v3 = vld [vmem:[%s2446_s0 + $0x10] sm:$0xff]  ;;  %s1770_s9 = smov 127   ;;  %s1771_s10 = smov 113  }
   0x3   :  { %s1772_s0 = smov 112  }
   0x6   :  { %76 = vrot.lane.b32.xlu1 %v1832_v1, %s1766_s23  ;;  %41 = vrot.lane.b32.xlu0 %v1832_v1, %s1767_s24 }
   0xa   :  { %80 = vrot.lane.b32.xlu1 %v1841_v2, %s1766_s23  ;;  %45 = vrot.lane.b32.xlu0 %v1841_v2, %s1767_s24 }
   0xe   :  { %109 = vrot.lane.b32.xlu1 %v1832_v1, %s1768_s29  ;;  %107 = vrot.lane.b32.xlu0 %v1823_v0, %s1768_s29 }
  0x12   :  { %142 = vrot.lane.b32.xlu1 %v1832_v1, %s1769_s30  ;;  %140 = vrot.lane.b32.xlu0 %v1823_v0, %s1769_s30 }
  0x16   :  { %146 = vrot.lane.b32.xlu1 %v1841_v2, %s1769_s30  ;;  %113 = vrot.lane.b32.xlu0 %v1841_v2, %s1768_s29 }
  0x1a   :  { %197 = vrot.lane.b32.xlu1 %v1858_v3, %s1770_s9  ;;  %195 = vrot.lane.b32.xlu0 %v1832_v1, %s1770_s9 }
  0x1e   :  { %228 = vrot.lane.b32.xlu1 %v1832_v1, %s1771_s10  ;;  %193 = vrot.lane.b32.xlu0 %v1823_v0, %s1770_s9 }
  0x22   :  { %261 = vrot.lane.b32.xlu1 %v1832_v1, %s1772_s0  ;;  %230 = vrot.lane.b32.xlu0 %v1858_v3, %s1771_s10 }
  0x26   :  { %226 = vrot.lane.b32.xlu1 %v1823_v0, %s1771_s10  ;;  %263 = vrot.lane.b32.xlu0 %v1858_v3, %s1772_s0 }
  0x27   :  { %11 = vsyncpa [#allocation3], 0  ;;  %s1773_s11 = smov 111   ;;  %v1774_v4 = vmov 0   ;;  %v38_v5 = vld [vmem:[%s2450_s4] sm:$0xff]  ;;  %v47_v6 = vlaneseq  ;;  %v1919_v11 = vld [vmem:[%s2448_s2 + $0x8] sm:$0xff] }
  0x28   :  { %399 = vmatprep.mubr.bf16.mxu1 %v1774_v4  ;;  %1649 = vset.pattern.permute.xlu0 %v1774_v4  ;;  %v1930_v16 = vld [vmem:[%s2448_s2] sm:$0xff]  ;;  %vm354_vm8 = vcmask 1043456   ;;  %vm350_vm9 = vcmask 588800   ;;  %s1777_s7 = smov 9   ;;  %s1778_s8 = smov 7   ;;  %vm1780_vm14 = vmmov 0  }
  0x29   :  { %1680 = vset.pattern.permute.xlu1 %v1774_v4  ;;  %v1906_v7 = vshrl.u32 %v47_v6, 7  ;;  %v1908_v8 = vand.u32 127, %v47_v6  ;;  %s1782_s12 = smov 120   ;;  %s1783_s26 = smov 126  }
  0x2a   :  { %292 = vrot.lane.b32.xlu1 %v1823_v0, %s1773_s11  ;;  %259 = vrot.lane.b32.xlu0 %v1823_v0, %s1772_s0 }
  0x2b   :  { %v1911_v9 = vsub.s32 1, %v1906_v7  ;;  %v1914_v10 = vsub.s32 0, %v1906_v7  ;;  %vm82_vm0 = vcmp.lt.s32.totalorder %v1908_v8, 16  ;;  %vm49_vm1 = vcmp.lt.s32.totalorder %v1908_v8, 17 }
  0x2c   :  { %v1957_v32 = vsub.s32 2, %v1906_v7  ;;  %v1960_v33 = vsub.s32 3, %v1906_v7  ;;  %vm115_vm2 = vcmp.lt.s32.totalorder %v1908_v8, 15  ;;  %vm148_vm3 = vcmp.lt.s32.totalorder %v1908_v8, 1 }
  0x2d   :  { %v61_v14 = vrot.slane %v1919_v11, %v1914_v10  ;;  %v94_v15 = vrot.slane %v1919_v11, %v1911_v9  ;;  %v90_v21 = vrot.slane %v1930_v16, %v1911_v9  ;;  %v57_v22 = vrot.slane %v1930_v16, %v1914_v10 }
  0x2e   :  { %296 = vrot.lane.b32.xlu1 %v1858_v3, %s1773_s11  ;;  %294 = vrot.lane.b32.xlu0 %v1832_v1, %s1773_s11  ;;  %v127_v37 = vrot.slane %v1919_v11, %v1957_v32  ;;  %v160_v38 = vrot.slane %v1919_v11, %v1960_v33  ;;  %v1976_v42 = vsub.s32 4, %v1906_v7  ;;  %v156_v44 = vrot.slane %v1930_v16, %v1960_v33 }
  0x2f   :  { %v123_v47 = vrot.slane %v1930_v16, %v1957_v32  ;;  %v1986_v48 = vsub.s32 5, %v1906_v7  ;;  %vm201_vm4 = vcmp.lt.s32.totalorder %v1908_v8, 127  ;;  %vm234_vm5 = vcmp.lt.s32.totalorder %v1908_v8, 113 }
  0x30   :  { %v180_v52 = vrot.slane %v1919_v11, %v1976_v42  ;;  %v176_v62 = vrot.slane %v1930_v16, %v1976_v42  ;;  %vm267_vm6 = vcmp.lt.s32.totalorder %v1908_v8, 112  ;;  %vm300_vm7 = vcmp.lt.s32.totalorder %v1908_v8, 111 }
  0x31   :  { %v213_v57 = vrot.slane %v1919_v11, %v1986_v48  ;;  %v209_v6 = vrot.slane %v1930_v16, %v1986_v48 }
  0x32   :  { %78 = vrot.lane.b32.xlu1 %v1858_v3, %s1766_s23  ;;  %43 = vrot.lane.b32.xlu0 %v1858_v3, %s1767_s24  ;;  %v190_v61 = vmul.f32 %v180_v52, %v1832_v1 }
  0x36   :  { %144 = vrot.lane.b32.xlu1 %v1858_v3, %s1769_s30  ;;  %111 = vrot.lane.b32.xlu0 %v1858_v3, %s1768_s29 }
  0x3a   :  { %232 = vrot.lane.b32.xlu1 %v1841_v2, %s1771_s10  ;;  %199 = vrot.lane.b32.xlu0 %v1841_v2, %s1770_s9  ;;  %s1781_s10 = smov 119  }
  0x3e   :  { %298 = vrot.lane.b32.xlu1 %v1841_v2, %s1773_s11  ;;  %265 = vrot.lane.b32.xlu0 %v1841_v2, %s1772_s0 }
  0x42   :  { %347 = vperm.xlu0 %1649, %v38_v5  }
  0x74   :  { %v75_v12 = vpop.permute.xlu1 %74  ;;  %v40_v13 = vpop.permute.xlu0 %39 }
  0x78   :  { %v1932_v17 = vpop.permute.xlu1 %76  ;;  %v1934_v18 = vpop.permute.xlu0 %41 }
  0x79   :  { %v85_v19 = vsel %vm82_vm0, %v75_v12, %v1932_v17  ;;  %v52_v20 = vsel %vm49_vm1, %v40_v13, %v1934_v18 }
  0x7a   :  { %v71_v23 = vmul.f32 %v61_v14, %v52_v20  ;;  %v104_v24 = vmul.f32 %v94_v15, %v85_v19  ;;  %v189_v15 = vmul.f32 %v176_v62, %v1823_v0  ;;  %v2020_v20 = vsub.s32 6, %v1906_v7 }
  0x7c   :  { %v1946_v25 = vpop.permute.xlu1 %80  ;;  %v1948_v26 = vpop.permute.xlu0 %45  ;;  %v326_v27 = vpack.c.bf16 %v104_v24, %v71_v23  ;;  %v246_v0 = vrot.slane %v1919_v11, %v2020_v20 }
  0x7d   :  { %v86_v28 = vsel %vm82_vm0, %v1946_v25, %v75_v12  ;;  %v53_v29 = vsel %vm49_vm1, %v1948_v26, %v40_v13 }
  0x7e   :  { %v103_v30 = vmul.f32 %v90_v21, %v86_v28  ;;  %v70_v31 = vmul.f32 %v57_v22, %v53_v29  ;;  %367 = vmatprep.subr.bf16.mxu1 %v326_v27  ;;  %v2023_v21 = vsub.s32 7, %v1906_v7 }
  0x80   :  { %v1962_v34 = vpop.permute.xlu1 %109  ;;  %v108_v35 = vpop.permute.xlu0 %107  ;;  %v325_v36 = vpack.c.bf16 %v103_v30, %v70_v31  ;;  %v279_v27 = vrot.slane %v1919_v11, %v2023_v21  ;;  %v275_v11 = vrot.slane %v1930_v16, %v2023_v21 }
  0x81   :  { %v118_v39 = vsel %vm115_vm2, %v108_v35, %v1962_v34 }
  0x82   :  { %368 = vmatpush1.bf16.msra.mxu1 %v325_v36  ;;  %v137_v45 = vmul.f32 %v127_v37, %v118_v39 }
  0x84   :  { %v1973_v40 = vpop.permute.xlu1 %142  ;;  %v141_v41 = vpop.permute.xlu0 %140 }
  0x85   :  { %v151_v43 = vsel %vm148_vm3, %v141_v41, %v1973_v40 }
  0x86   :  { %v170_v46 = vmul.f32 %v160_v38, %v151_v43 }
  0x88   :  { %v1988_v49 = vpop.permute.xlu1 %146  ;;  %v1990_v50 = vpop.permute.xlu0 %113  ;;  %v330_v51 = vpack.c.bf16 %v170_v46, %v137_v45  ;;  %v2066_v46 = vld [vmem:[%s2448_s2 + $0x18] sm:$0xff] }
  0x89   :  { %v152_v53 = vsel %vm148_vm3, %v1988_v49, %v141_v41  ;;  %v119_v54 = vsel %vm115_vm2, %v1990_v50, %v108_v35  ;;  %v242_v35 = vrot.slane %v1930_v16, %v2020_v20  ;;  %v2061_v16 = vld [vmem:[%s2448_s2 + $0x10] sm:$0xff] }
  0x8a   :  { %v169_v55 = vmul.f32 %v156_v44, %v152_v53  ;;  %v136_v56 = vmul.f32 %v123_v47, %v119_v54  ;;  %369 = vmatprep.subr.bf16.mxu1 %v330_v51  ;;  %v1432_v47 = vld [vmem:[%s2448_s2 + $0x20] ss:$0 sm:$0xff]  ;;  %v1433_v51 = vld [vmem:[%s2448_s2 + $0x28] ss:$0 sm:$0xff]  ;;  %v65_v62 = vrot.slane %v2061_v16, %v1914_v10 }
  0x8c   :  { %v2003_v58 = vpop.permute.xlu1 %197  ;;  %v196_v59 = vpop.permute.xlu0 %195  ;;  %v329_v60 = vpack.c.bf16 %v169_v55, %v136_v56 }
  0x8d   :  { %v203_v63 = vsel %vm201_vm4, %v196_v59, %v2003_v58 }
  0x8e   :  { %v223_v5 = vmul.f32 %v213_v57, %v203_v63  ;;  %370 = vmatpush1.bf16.msra.mxu1 %v329_v60  ;;  %v98_v57 = vrot.slane %v2061_v16, %v1911_v9  ;;  %v69_v63 = vrot.slane %v2066_v46, %v1914_v10 }
  0x90   :  { %v229_v12 = vpop.permute.xlu1 %228  ;;  %v2013_v13 = vpop.permute.xlu0 %193  ;;  %v334_v14 = vpack.c.bf16 %v223_v5, %v190_v61  ;;  %v164_v5 = vrot.slane %v2061_v16, %v1960_v33 }
  0x91   :  { %v204_v1 = vsel %vm201_vm4, %v2013_v13, %v196_v59  ;;  %v102_v59 = vrot.slane %v2066_v46, %v1911_v9 }
  0x92   :  { %v222_v19 = vmul.f32 %v209_v6, %v204_v1  ;;  %371 = vmatprep.subr.bf16.mxu1 %v334_v14  ;;  %v168_v6 = vrot.slane %v2066_v46, %v1960_v33 }
  0x94   :  { %v262_v22 = vpop.permute.xlu1 %261  ;;  %v2026_v23 = vpop.permute.xlu0 %230  ;;  %v333_v24 = vpack.c.bf16 %v222_v19, %v189_v15  ;;  %v131_v19 = vrot.slane %v2061_v16, %v1957_v32 }
  0x95   :  { %v236_v7 = vsel %vm234_vm5, %v229_v12, %v2026_v23 }
  0x96   :  { %372 = vmatpush1.bf16.msra.mxu1 %v333_v24  ;;  %v256_v31 = vmul.f32 %v246_v0, %v236_v7 }
  0x98   :  { %v2036_v28 = vpop.permute.xlu1 %226  ;;  %v2038_v29 = vpop.permute.xlu0 %263 }
  0x99   :  { %v269_v30 = vsel %vm267_vm6, %v262_v22, %v2038_v29  ;;  %v237_v37 = vsel %vm234_vm5, %v2036_v28, %v229_v12 }
  0x9a   :  { %v289_v36 = vmul.f32 %v279_v27, %v269_v30  ;;  %v255_v44 = vmul.f32 %v242_v35, %v237_v37 }
  0x9c   :  { %v2050_v38 = vpop.permute.xlu1 %292  ;;  %v2052_v39 = vpop.permute.xlu0 %259  ;;  %v338_v41 = vpack.c.bf16 %v289_v36, %v256_v31 }
  0x9d   :  { %v270_v43 = vsel %vm267_vm6, %v2052_v39, %v262_v22  ;;  %v135_v22 = vrot.slane %v2066_v46, %v1957_v32 }
  0x9e   :  { %v288_v45 = vmul.f32 %v275_v11, %v270_v43  ;;  %373 = vmatprep.subr.bf16.mxu1 %v338_v41  ;;  %v217_v11 = vrot.slane %v2061_v16, %v1986_v48 }
  0xa0   :  { %v2074_v52 = vpop.permute.xlu1 %296  ;;  %v295_v53 = vpop.permute.xlu0 %294  ;;  %v337_v54 = vpack.c.bf16 %v288_v45, %v255_v44  ;;  %v221_v44 = vrot.slane %v2066_v46, %v1986_v48  ;;  %v188_v45 = vrot.slane %v2066_v46, %v1976_v42 }
  0xa1   :  { %v302_v55 = vsel %vm300_vm7, %v295_v53, %v2074_v52  ;;  %v303_v56 = vsel %vm300_vm7, %v2050_v38, %v295_v53 }
  0xa2   :  { %v321_v60 = vmul.f32 %v1432_v47, %v303_v56  ;;  %v322_v61 = vmul.f32 %v1433_v51, %v302_v55  ;;  %374 = vmatpush1.bf16.msra.mxu1 %v337_v54 }
  0xa4   :  { %v341_v12 = vpack.c.bf16 %v321_v60, %v321_v60  ;;  %v342_v14 = vpack.c.bf16 %v322_v61, %v322_v61  ;;  %v79_v15 = vpop.permute.xlu1 %78  ;;  %v44_v1 = vpop.permute.xlu0 %43 }
  0xa5   :  { %v83_v24 = vsel %vm82_vm0, %v79_v15, %v1946_v25  ;;  %v84_v0 = vsel %vm82_vm0, %v1932_v17, %v79_v15  ;;  %v50_v27 = vsel %vm49_vm1, %v44_v1, %v1948_v26  ;;  %v51_v7 = vsel %vm49_vm1, %v1934_v18, %v44_v1  ;;  %v29_v18 = vld [vmem:[%s2447_s1] sm:$0xf] }
  0xa6   :  { %v105_v30 = vmul.f32 %v98_v57, %v84_v0  ;;  %v106_v31 = vmul.f32 %v102_v59, %v83_v24  ;;  %v72_v35 = vmul.f32 %v65_v62, %v51_v7  ;;  %v73_v36 = vmul.f32 %v69_v63, %v50_v27  ;;  %1436 = vmatprep.subr.msk.bf16.mxu1 %vm354_vm8, %v342_v14 }
  0xa7   :  { %v356_v25 = vsel %vm354_vm8, %v341_v12, 0  ;;  %v184_v17 = vrot.slane %v2061_v16, %v1976_v42  ;;  %v254_v63 = vrot.slane %v2066_v46, %v2020_v20  ;;  %v287_v14 = vrot.slane %v2066_v46, %v2023_v21 }
  0xa8   :  { %v327_v26 = vpack.c.bf16 %v105_v30, %v72_v35  ;;  %376 = vmatpush1.bf16.msra.mxu1 %v356_v25  ;;  %v145_v37 = vpop.permute.xlu1 %144  ;;  %v112_v41 = vpop.permute.xlu0 %111  ;;  %v328_v43 = vpack.c.bf16 %v106_v31, %v73_v36  ;;  %vm1009_vm1 = vcmask 130048  }
  0xa9   :  { %v149_v47 = vsel %vm148_vm3, %v145_v37, %v1988_v49  ;;  %v150_v51 = vsel %vm148_vm3, %v1973_v40, %v145_v37  ;;  %v116_v53 = vsel %vm115_vm2, %v112_v41, %v1990_v50  ;;  %v117_v54 = vsel %vm115_vm2, %v1962_v34, %v112_v41  ;;  %v1697_v37 = vld [vmem:[%s2447_s1 + $0x118] sm:$0xff]  }
  0xaa   :  { %v171_v55 = vmul.f32 %v164_v5, %v150_v51  ;;  %v172_v56 = vmul.f32 %v168_v6, %v149_v47  ;;  %v138_v57 = vmul.f32 %v131_v19, %v117_v54  ;;  %v139_v59 = vmul.f32 %v135_v22, %v116_v53  ;;  %408 = vmatprep.subr.bf16.mxu1 %v328_v43  ;;  %v1700_v51 = vld [vmem:[%s2447_s1 + $0xa0] sm:$0xff]  }
  0xab   :  { %1437 = vmatmul.mubr.msk.bf16.vlgmr.msra.gmra.mrb[0].mxu1 %vm350_vm9, %v29_v18  ;;  %v191_v49 = vmul.f32 %v184_v17, %v1858_v3  ;;  %v192_v50 = vmul.f32 %v188_v45, %v1841_v2  ;;  %v250_v34 = vrot.slane %v2061_v16, %v2020_v20  ;;  %v283_v2 = vrot.slane %v2061_v16, %v2023_v21  ;;  %v1435_v16 = vld [vmem:[%s2448_s2 + $0x38] ss:$0 sm:$0xff]  ;;  %v1701_v53 = vld [vmem:[%s2447_s1 + $0x120] sm:$0xff]  }
  0xac   :  { %v331_v60 = vpack.c.bf16 %v171_v55, %v138_v57  ;;  %409 = vmatpush1.bf16.msra.mxu1 %v327_v26  ;;  %v233_v40 = vpop.permute.xlu1 %232  ;;  %v200_v61 = vpop.permute.xlu0 %199  ;;  %v332_v62 = vpack.c.bf16 %v172_v56, %v139_v59  ;;  %440 = vmatprep.mubr.bf16.mxu1 %v1774_v4  ;;  %v1696_v26 = vld [vmem:[%s2447_s1 + $0x98] sm:$0xff]   ;;  %v1702_v56 = vld [vmem:[%s2447_s1 + $0x60] sm:$0xff]  }
  0xad   :  { %v202_v5 = vsel %vm201_vm4, %v2003_v58, %v200_v61  ;;  %v205_v3 = vsel %vm201_vm4, %v200_v61, %v2013_v13  ;;  %v235_v15 = vsel %vm234_vm5, %v2026_v23, %v233_v40  ;;  %v238_v58 = vsel %vm234_vm5, %v233_v40, %v2036_v28  ;;  %v1434_v13 = vld [vmem:[%s2448_s2 + $0x30] ss:$0 sm:$0xff]  ;;  %1490 = vmatprep.subr.bf16.mxu0 %v1696_v26  ;;  %v1703_v57 = vld [vmem:[%s2447_s1 + $0xe0] sm:$0xff]   ;;  %s1779_s2 = smov 121  }
  0xae   :  { %v224_v6 = vmul.f32 %v217_v11, %v202_v5  ;;  %v225_v12 = vmul.f32 %v221_v44, %v205_v3  ;;  %410 = vmatprep.subr.bf16.mxu1 %v332_v62  ;;  %v257_v27 = vmul.f32 %v250_v34, %v235_v15  ;;  %v258_v7 = vmul.f32 %v254_v63, %v238_v58  ;;  %v1698_v44 = vld [vmem:[%s2447_s1 + $0x58] sm:$0xff]   ;;  %v1707_v34 = vld [vmem:[%s2447_s1 + $0xe8] sm:$0xff]   ;;  %v1708_v63 = vld [vmem:[%s2447_s1 + $0xb0] sm:$0xff]  }
  0xaf   :  { %1491 = vmatpush3.bf16.msra.mxu0 %v1698_v44  ;;  %v1709_v5 = vld [vmem:[%s2447_s1 + $0x130] sm:$0xff]   ;;  %v1715_v15 = vld [vmem:[%s2447_s1 + $0xf8] sm:$0xff]  }
  0xb0   :  { %v335_v1 = vpack.c.bf16 %v224_v6, %v191_v49  ;;  %411 = vmatpush1.bf16.msra.mxu1 %v331_v60  ;;  %v299_v19 = vpop.permute.xlu1 %298  ;;  %v266_v46 = vpop.permute.xlu0 %265  ;;  %v336_v22 = vpack.c.bf16 %v225_v12, %v192_v50  ;;  %1492 = vmatprep.subr.bf16.mxu0 %v1700_v51  ;;  %v1704_v49 = vld [vmem:[%s2447_s1 + $0xa8] sm:$0xff]   ;;  %v1710_v3 = vld [vmem:[%s2447_s1 + $0x70] sm:$0xff]   ;;  %v1712_v12 = vld [vmem:[%s2447_s1 + $0xb8] sm:$0xff]  }
  0xb1   :  { %v301_v23 = vsel %vm300_vm7, %v2074_v52, %v299_v19  ;;  %v304_v28 = vsel %vm300_vm7, %v299_v19, %v2050_v38  ;;  %v268_v24 = vsel %vm267_vm6, %v2038_v29, %v266_v46  ;;  %v271_v0 = vsel %vm267_vm6, %v266_v46, %v2052_v39  ;;  %v1705_v60 = vld [vmem:[%s2447_s1 + $0x128] sm:$0xff]   ;;  %v1711_v6 = vld [vmem:[%s2447_s1 + $0xf0] sm:$0xff]   ;;  %v1718_v46 = vld [vmem:[%s2447_s1 + $0x80] sm:$0xff]  }
  0xb2   :  { %v290_v30 = vmul.f32 %v283_v2, %v268_v24  ;;  %v291_v31 = vmul.f32 %v287_v14, %v271_v0  ;;  %412 = vmatprep.subr.bf16.mxu1 %v336_v22  ;;  %v323_v35 = vmul.f32 %v1434_v13, %v301_v23  ;;  %v324_v36 = vmul.f32 %v1435_v16, %v304_v28  ;;  %v1706_v50 = vld [vmem:[%s2447_s1 + $0x68] sm:$0xff]   ;;  %v1713_v2 = vld [vmem:[%s2447_s1 + $0x138] sm:$0xff]   ;;  %v1717_v13 = vld [vmem:[%s2447_s1 + $0x140] sm:$0xff]  }
  0xb3   :  { %1493 = vmatpush3.bf16.msra.mxu0 %v1702_v56  ;;  %v1714_v14 = vld [vmem:[%s2447_s1 + $0x78] sm:$0xff]   ;;  %v1719_v22 = vld [vmem:[%s2447_s1 + $0x100] sm:$0xff]  }
  0xb4   :  { %v339_v52 = vpack.c.bf16 %v290_v30, %v257_v27  ;;  %413 = vmatpush1.bf16.msra.mxu1 %v335_v1  ;;  %v340_v25 = vpack.c.bf16 %v291_v31, %v258_v7  ;;  %v343_v38 = vpack.c.bf16 %v323_v35, %v323_v35  ;;  %v344_v17 = vpack.c.bf16 %v324_v36, %v324_v36  ;;  %v1716_v1 = vld [vmem:[%s2447_s1 + $0xc0] sm:$0xff]   ;;  %v1720_v7 = vld [vmem:[%s2447_s1 + $0xc8] sm:$0xff]  }
  0xb5   :  { %1494 = vmatprep.subr.bf16.mxu0 %v1704_v49  ;;  %v1721_v30 = vld [vmem:[%s2447_s1 + $0x148] sm:$0xff]  }
  0xb6   :  { %414 = vmatprep.subr.bf16.mxu1 %v340_v25  ;;  %v362_v29 = vsel %vm354_vm8, %v343_v38, 0  ;;  %v1722_v35 = vld [vmem:[%s2447_s1 + $0x88] sm:$0xff]   ;;  %v1724_v38 = vld [vmem:[%s2447_s1 + $0xd0] sm:$0xff]  }
  0xb7   :  { %1495 = vmatpush3.bf16.msra.mxu0 %v1706_v50  ;;  %v1723_v36 = vld [vmem:[%s2447_s1 + $0x108] sm:$0xff]  }
  0xb8   :  { %415 = vmatpush1.bf16.msra.mxu1 %v339_v52  ;;  %1496 = vmatprep.subr.bf16.mxu0 %v1708_v63 }
  0xb9   :  { %1438 = vmatprep.subr.msk.bf16.mxu1 %vm354_vm8, %v344_v17  ;;  %v1725_v17 = vld [vmem:[%s2447_s1 + $0x150] sm:$0xff]  }
  0xbb   :  { %1497 = vmatpush3.bf16.msra.mxu0 %v1710_v3 }
  0xbc   :  { %417 = vmatpush1.bf16.msra.mxu1 %v362_v29  ;;  %1498 = vmatprep.subr.bf16.mxu0 %v1712_v12  ;;  %v1726_v29 = vld [vmem:[%s2447_s1 + $0x90] sm:$0xff]  }
  0xbd   :  { %1512 = vmatprep.subr.bf16.mxu1 %v1697_v37 }
  0xbf   :  { %1439 = vmatmul.mubr.msk.bf16.vlgmr.msra.gmra.mrb[4].mxu1 %vm350_vm9, %v29_v18  ;;  %v1699_v18 = vld [vmem:[%s2447_s1 + $0xd8] sm:$0xff]   ;;  %1499 = vmatpush3.bf16.msra.mxu0 %v1714_v14 }
  0xc0   :  { %1513 = vmatpush3.bf16.msra.mxu1 %v1699_v18  ;;  %1500 = vmatprep.subr.bf16.mxu0 %v1716_v1 }
  0xc1   :  { %v2180_v39 = vpop.permute.xlu0 %347  ;;  %1514 = vmatprep.subr.bf16.mxu1 %v1701_v53 }
  0xc3   :  { %1501 = vmatpush3.bf16.msra.mxu0 %v1718_v46 }
  0xc4   :  { %1515 = vmatpush3.bf16.msra.mxu1 %v1703_v57  ;;  %1502 = vmatprep.subr.bf16.mxu0 %v1720_v7 }
  0xc5   :  { %1516 = vmatprep.subr.bf16.mxu1 %v1705_v60 }
  0xc7   :  { %1503 = vmatpush3.bf16.msra.mxu0 %v1722_v35  ;;  %v1775_v35 = vmov 0.0  }
  0xc8   :  { %1517 = vmatpush3.bf16.msra.mxu1 %v1707_v34  ;;  %1504 = vmatprep.subr.bf16.mxu0 %v1724_v38 }
  0xc9   :  { %1518 = vmatprep.subr.bf16.mxu1 %v1709_v5 }
  0xcb   :  { %1505 = vmatpush3.bf16.msra.mxu0 %v1726_v29 }
  0xcc   :  { %1519 = vmatpush3.bf16.msra.mxu1 %v1711_v6  ;;  %1557 = vmatprep.subr.bf16.mxu0 %v1775_v35 }
  0xcd   :  { %1520 = vmatprep.subr.bf16.mxu1 %v1713_v2 }
  0xd0   :  { %1521 = vmatpush3.bf16.msra.mxu1 %v1715_v15 }
  0xd1   :  { %1522 = vmatprep.subr.bf16.mxu1 %v1717_v13 }
  0xd4   :  { %1523 = vmatpush3.bf16.msra.mxu1 %v1719_v22 }
  0xd5   :  { %1524 = vmatprep.subr.bf16.mxu1 %v1721_v30 }
  0xd8   :  { %1525 = vmatpush3.bf16.msra.mxu1 %v1723_v36 }
  0xd9   :  { %1526 = vmatprep.subr.bf16.mxu1 %v1725_v17 }
 0x17e   :  { %v401_v11 = vpop.f32.mrb[0].mxu1 }
 0x17f   :  { %v402_v41 = vadd.f32 %v401_v11, %v2180_v39  ;;  %v403_v43 = vpop.f32.mrb[1].mxu1 }
 0x180   :  { %v404_v45 = vadd.f32 %v403_v43, %v2180_v39  ;;  %v405_v47 = vpop.f32.mrb[2].mxu1 }
 0x181   :  { %vm449_vm10 = vcmp.gt.f32.partialorder %v402_v41, 0.0  ;;  %v453_v54 = vmul.f32 0.1, %v402_v41  ;;  %v406_v55 = vpop.f32.mrb[3].mxu1 }
 0x182   :  { %vm450_vm11 = vcmp.gt.f32.partialorder %v404_v45, 0.0  ;;  %v454_v59 = vmul.f32 0.1, %v404_v45 }
 0x183   :  { %v2214_v40 = vsel %vm449_vm10, %v402_v41, %v453_v54  ;;  %vm1174_vm10 = vcmask 261120  }
 0x184   :  { %v2216_v61 = vsel %vm450_vm11, %v404_v45, %v454_v59 }
 0x185   :  { %v1655_v62 = vpack.i.bf16 %v2216_v61, %v2214_v40 }
 0x187   :  { %1656 = vrot.lane.b32.xlu0 %v1655_v62, %s1772_s0  ;;  %1651 = vrot.lane.b32.xlu1 %v1655_v62, %s1770_s9 }
 0x18b   :  { %1661 = vrot.lane.b32.xlu0 %v1655_v62, %s1773_s11 }
 0x192   :  { %v442_v58 = vpop.f32.mrb[4].mxu1 }
 0x193   :  { %v443_v16 = vadd.f32 %v442_v58, %v2180_v39  ;;  %v444_v19 = vpop.f32.mrb[5].mxu1 }
 0x194   :  { %v445_v23 = vadd.f32 %v444_v19, %v2180_v39  ;;  %v446_v28 = vpop.f32.mrb[6].mxu1  ;;  %v1727_v39 = vld [vmem:[%s2447_s1 + $0x110] sm:$0xff]  }
 0x195   :  { %vm451_vm12 = vcmp.gt.f32.partialorder %v443_v16, 0.0  ;;  %v455_v24 = vmul.f32 0.1, %v443_v16  ;;  %v447_v0 = vpop.f32.mrb[7].mxu1  ;;  %1527 = vmatpush3.bf16.msra.mxu1 %v1727_v39 }
 0x196   :  { %vm452_vm13 = vcmp.gt.f32.partialorder %v445_v23, 0.0  ;;  %v456_v27 = vmul.f32 0.1, %v445_v23  ;;  %1577 = vmatprep.subr.bf16.mxu1 %v1775_v35 }
 0x197   :  { %v459_v31 = vsel %vm451_vm12, %v443_v16, %v455_v24  ;;  %vm1405_vm12 = vcmask 254976  }
 0x198   :  { %v460_v52 = vsel %vm452_vm13, %v445_v23, %v456_v27 }
 0x199   :  { %v1665_v25 = vpack.i.bf16 %v460_v52, %v459_v31 }
 0x19b   :  { %1666 = vrot.lane.b32.xlu1 %v1665_v25, %s1770_s9 }
 0x19f   :  { %1671 = vrot.lane.b32.xlu1 %v1665_v25, %s1772_s0 }
 0x1a3   :  { %1676 = vrot.lane.b32.xlu1 %v1665_v25, %s1773_s11  ;;  %s1776_s11 = smov 8  }
 0x1f9   :  { %v1657_v11 = vpop.permute.xlu0 %1656  ;;  %v1652_v26 = vpop.permute.xlu1 %1651 }
 0x1fa   :  { %v1654_v43 = vunpack.i.h.bf16 %v1652_v26  ;;  %v1653_v44 = vunpack.i.l.bf16 %v1652_v26  ;;  %v1659_v53 = vunpack.i.h.bf16 %v1657_v11  ;;  %v1658_v54 = vunpack.i.l.bf16 %v1657_v11 }
 0x1fc   :  { %v471_v56 = vsel %vm201_vm4, %v1653_v44, %v1654_v43  ;;  %v487_v50 = vsel %vm267_vm6, %v1658_v54, %v1659_v53 }
 0x1fd   :  { %v1662_v37 = vpop.permute.xlu0 %1661  ;;  %v473_v63 = vmax.f32 %v2214_v40, %v471_v56 }
 0x1fe   :  { %v1664_v18 = vunpack.i.h.bf16 %v1662_v37  ;;  %v1663_v45 = vunpack.i.l.bf16 %v1662_v37 }
 0x200   :  { %v499_v57 = vsel %vm300_vm7, %v1663_v45, %v1664_v18 }
 0x201   :  { %v501_v12 = vmax.f32 %v487_v50, %v499_v57 }
 0x203   :  { %v505_v28 = vmax.f32 %v473_v63, %v501_v12 }
 0x20d   :  { %v1667_v41 = vpop.permute.xlu1 %1666 }
 0x20e   :  { %v1669_v47 = vunpack.i.h.bf16 %v1667_v41  ;;  %v1668_v51 = vunpack.i.l.bf16 %v1667_v41  ;;  %v853_v41 = vld [vmem:[%s2450_s4 + $0x8] sm:$0xff] }
 0x210   :  { %v469_v60 = vsel %vm201_vm4, %v1668_v51, %v1669_v47  ;;  %v470_v62 = vsel %vm201_vm4, %v1654_v43, %v1668_v51  ;;  %v472_v5 = vsel %vm201_vm4, %v1669_v47, %v1653_v44  ;;  %v992_v43 = vld [vmem:[%s2450_s4 + $0x18] sm:$0xff]  ;;  %v854_v44 = vld [vmem:[%s2450_s4 + $0x10] sm:$0xff] }
 0x211   :  { %v1672_v55 = vpop.permute.xlu1 %1671  ;;  %v475_v2 = vmax.f32 %v459_v31, %v469_v60  ;;  %v474_v58 = vmax.f32 %v2216_v61, %v470_v62  ;;  %v476_v22 = vmax.f32 %v460_v52, %v472_v5  ;;  %v509_v31 = vpack.c.bf16 %v505_v28, %v505_v28 }
 0x212   :  { %v1674_v59 = vunpack.i.h.bf16 %v1672_v55  ;;  %v1673_v49 = vunpack.i.l.bf16 %v1672_v55 }
 0x214   :  { %v488_v14 = vsel %vm267_vm6, %v1674_v59, %v1658_v54  ;;  %v485_v15 = vsel %vm267_vm6, %v1673_v49, %v1674_v59  ;;  %v486_v13 = vsel %vm267_vm6, %v1659_v53, %v1673_v49 }
 0x215   :  { %v1677_v34 = vpop.permute.xlu1 %1676 }
 0x216   :  { %v1679_v3 = vunpack.i.h.bf16 %v1677_v34  ;;  %v1678_v6 = vunpack.i.l.bf16 %v1677_v34 }
 0x218   :  { %v500_v1 = vsel %vm300_vm7, %v1679_v3, %v1663_v45  ;;  %v497_v40 = vsel %vm300_vm7, %v1678_v6, %v1679_v3  ;;  %v498_v16 = vsel %vm300_vm7, %v1664_v18, %v1678_v6  ;;  %v993_v18 = vld [vmem:[%s2450_s4 + $0x20] sm:$0xff] }
 0x219   :  { %v503_v19 = vmax.f32 %v485_v15, %v497_v40  ;;  %v502_v46 = vmax.f32 %v486_v13, %v498_v16  ;;  %v504_v23 = vmax.f32 %v488_v14, %v500_v1  ;;  %v851_v45 = vld [vmem:[%s2449_s3] sm:$0xff]  ;;  %v1472_v14 = vld [vmem:[%s2449_s3 + $0x8] ss:$0 sm:$0xff] }
 0x21a   :  { %v867_v47 = vrot.slane %v851_v45, %v1911_v9  ;;  %v860_v51 = vrot.slane %v851_v45, %v1914_v10  ;;  %v881_v57 = vrot.slane %v851_v45, %v1960_v33  ;;  %v874_v59 = vrot.slane %v851_v45, %v1957_v32  ;;  %v1728_v16 = vld [vmem:[%s2447_s1 + $0x4] sm:$0xff]  }
 0x21b   :  { %v506_v24 = vmax.f32 %v474_v58, %v502_v46  ;;  %v508_v0 = vmax.f32 %v476_v22, %v504_v23  ;;  %v507_v61 = vmax.f32 %v475_v2, %v503_v19  ;;  %v886_v63 = vrot.slane %v851_v45, %v1976_v42 }
 0x21c   :  { %v893_v9 = vrot.slane %v851_v45, %v1986_v48  ;;  %v900_v12 = vrot.slane %v851_v45, %v2020_v20  ;;  %v907_v32 = vrot.slane %v851_v45, %v2023_v21 }
 0x21d   :  { %v510_v27 = vpack.c.bf16 %v506_v24, %v506_v24  ;;  %v512_v7 = vpack.c.bf16 %v508_v0, %v508_v0  ;;  %v511_v30 = vpack.c.bf16 %v507_v61, %v507_v61 }
 0x21f   :  { %801 = vmatprep.mubr.bf16.mxu0 %v510_v27  ;;  %841 = vmatprep.mubr.bf16.mxu1 %v512_v7 }
 0x220   :  { %802 = vmatmul.mubr.bf16.vlgmr.msra.gmra.mrb[0].mxu0 %v509_v31  ;;  %842 = vmatmul.mubr.bf16.vlgmr.msra.gmra.mrb[8].mxu1 %v511_v30 }
 0x221   :  { %1567 = vmatprep.mubr.msk.bf16.mxu0 %vm1780_vm14, %v1775_v35  ;;  %1581 = vmatprep.mubr.msk.bf16.mxu1 %vm1780_vm14, %v1775_v35 }
 0x2f3   :  { %v1506_v8 = vpop.f32.mrb[0].mxu0  ;;  %v1528_v36 = vpop.f32.mrb[8].mxu1 }
 0x2f4   :  { %v1507_v52 = vpop.f32.mrb[1].mxu0  ;;  %v1529_v25 = vpop.f32.mrb[9].mxu1 }
 0x2f5   :  { %v1508_v38 = vadd.f32 %v1507_v52, %v1506_v8  ;;  %v1530_v17 = vadd.f32 %v1529_v25, %v1528_v36  ;;  %v1509_v29 = vpop.f32.mrb[2].mxu0  ;;  %v1531_v39 = vpop.f32.mrb[10].mxu1  ;;  %v1729_v36 = vld [vmem:[%s2447_s1 + $0xc] sm:$0xff]  }
 0x2f6   :  { %v1510_v11 = vpop.f32.mrb[3].mxu0  ;;  %v1532_v26 = vpop.f32.mrb[11].mxu1 }
 0x2f7   :  { %v844_v37 = vadd.f32 %v1530_v17, %v1508_v38 }
 0x2f9   :  { %862 = vrot.lane.b32.xlu1 %v844_v37, %s1776_s11  ;;  %855 = vrot.lane.b32.xlu0 %v844_v37, %s1777_s7  ;;  %v887_v33 = vmul.f32 %v886_v63, %v844_v37 }
 0x2fd   :  { %876 = vrot.lane.b32.xlu1 %v844_v37, %s1769_s30  ;;  %869 = vrot.lane.b32.xlu0 %v844_v37, %s1778_s8 }
 0x301   :  { %895 = vrot.lane.b32.xlu1 %v844_v37, %s1779_s2  ;;  %888 = vrot.lane.b32.xlu0 %v844_v37, %s1770_s9 }
 0x305   :  { %909 = vrot.lane.b32.xlu1 %v844_v37, %s1781_s10  ;;  %902 = vrot.lane.b32.xlu0 %v844_v37, %s1782_s12 }
 0x309   :  { %923 = vperm.xlu0 %1649, %v853_v41   ;;  %928 = vperm.xlu1 %1680, %v854_v44  }
 0x30d   :  { %996 = vperm.xlu0 %1649, %v992_v43   ;;  %1001 = vperm.xlu1 %1680, %v993_v18  }
 0x36b   :  { %v863_v53 = vpop.permute.xlu1 %862  ;;  %v856_v54 = vpop.permute.xlu0 %855 }
 0x36c   :  { %v868_v55 = vmul.f32 %v867_v47, %v863_v53  ;;  %v861_v56 = vmul.f32 %v860_v51, %v856_v54 }
 0x36e   :  { %v916_v49 = vpack.c.bf16 %v868_v55, %v861_v56  ;;  %v1070_v56 = vld [vmem:[%s2449_s3 + $0xa] sm:$0x1] }
 0x36f   :  { %v877_v60 = vpop.permute.xlu1 %876  ;;  %v870_v62 = vpop.permute.xlu0 %869  ;;  %vm1071_vm6 = vcmp.gt.f32.partialorder %v1070_v56, 0.5 }
 0x370   :  { %v882_v50 = vmul.f32 %v881_v57, %v877_v60  ;;  %v875_v34 = vmul.f32 %v874_v59, %v870_v62  ;;  %1558 = vmatpush3.bf16.msra.mxu0 %v916_v49  ;;  %v1088_v57 = vsel %vm1071_vm6, 1, %v1774_v4 }
 0x371   :  { %1559 = vmatprep.subr.bf16.mxu0 %v1775_v35  ;;  %v1092_v59 = vrot.slane %v1088_v57, %v1914_v10 }
 0x372   :  { %v917_v5 = vpack.c.bf16 %v882_v50, %v875_v34 }
 0x373   :  { %v896_v3 = vpop.permute.xlu1 %895  ;;  %v889_v6 = vpop.permute.xlu0 %888  ;;  %vm1093_vm7 = vcmp.eq.s32.totalorder %v1092_v59, 1 }
 0x374   :  { %v894_v2 = vmul.f32 %v893_v9, %v889_v6  ;;  %1560 = vmatpush3.bf16.msra.mxu0 %v917_v5  ;;  %v901_v58 = vmul.f32 %v900_v12, %v896_v3  ;;  %v1730_v9 = vld [vmem:[%s2447_s1 + $0x24] sm:$0xff]  }
 0x375   :  { %1561 = vmatprep.subr.bf16.mxu0 %v1775_v35  ;;  %v1068_v5 = vld [vmem:[%s2449_s3 + $0x9] sm:$0x1] }
 0x376   :  { %v918_v42 = vpack.c.bf16 %v894_v2, %v887_v33 }
 0x377   :  { %v910_v48 = vpop.permute.xlu1 %909  ;;  %v903_v15 = vpop.permute.xlu0 %902 }
 0x378   :  { %v915_v1 = vmul.f32 %v1472_v14, %v910_v48  ;;  %v908_v40 = vmul.f32 %v907_v32, %v903_v15  ;;  %1562 = vmatpush3.bf16.msra.mxu0 %v918_v42 }
 0x379   :  { %1563 = vmatprep.subr.bf16.mxu0 %v1775_v35 }
 0x37a   :  { %v919_v20 = vpack.c.bf16 %v908_v40, %v901_v58  ;;  %v920_v13 = vpack.c.bf16 %v915_v1, %v915_v1 }
 0x37c   :  { %1564 = vmatpush3.bf16.msra.mxu0 %v919_v20  ;;  %v940_v21 = vsel %vm354_vm8, %v920_v13, 0  ;;  %vm1069_vm8 = vcmp.gt.f32.partialorder %v1068_v5, 0.5 }
 0x37d   :  { %1565 = vmatprep.subr.bf16.mxu0 %v1775_v35  ;;  %v1076_v3 = vsel %vm1069_vm8, 1, %v1774_v4 }
 0x37e   :  { %v1080_v6 = vrot.slane %v1076_v3, %v1914_v10 }
 0x380   :  { %1566 = vmatpush3.bf16.msra.mxu0 %v940_v21 }
 0x381   :  { %1571 = vmatprep.subr.bf16.mxu0 %v1775_v35 }
 0x383   :  { %1568 = vmatmul.mubr.msk.bf16.vlgmr.msra.gmra.mrb[4].mxu0 %vm350_vm9, %v1728_v16  ;;  %vm1081_vm9 = vcmp.eq.s32.totalorder %v1080_v6, 1 }
 0x384   :  { %1573 = vmatprep.mubr.msk.bf16.mxu0 %vm1780_vm14, %v1775_v35 }
 0x388   :  { %v924_v19 = vpop.permute.xlu0 %923  ;;  %v929_v28 = vpop.permute.xlu1 %928 }
 0x38c   :  { %v997_v52 = vpop.permute.xlu0 %996  ;;  %v1002_v29 = vpop.permute.xlu1 %1001 }
 0x456   :  { %v976_v46 = vpop.f32.mrb[4].mxu0 }
 0x457   :  { %v977_v22 = vadd.f32 %v976_v46, %v924_v19  ;;  %v1569_v23 = vpop.f32.mrb[5].mxu0  ;;  %v1110_v46 = vld [vmem:[%s2447_s1 + $0x54] sm:$0xf] }
 0x458   :  { %v979_v24 = vpop.f32.mrb[6].mxu0 }
 0x459   :  { %v985_v0 = vmul.f32 0.1, %v977_v22  ;;  %v980_v61 = vadd.f32 %v979_v24, %v929_v28  ;;  %v1570_v27 = vpop.f32.mrb[7].mxu0  ;;  %vm983_vm15 = vcmp.gt.f32.partialorder %v977_v22, 0.0 }
 0x45b   :  { %vm984_vm0 = vcmp.gt.f32.partialorder %v980_v61, 0.0  ;;  %v986_v7 = vmul.f32 0.1, %v980_v61  ;;  %v987_v30 = vsel %vm983_vm15, %v977_v22, %v985_v0  ;;  %v1731_v22 = vld [vmem:[%s2447_s1 + $0x2c] sm:$0xff]  }
 0x45d   :  { %v988_v31 = vsel %vm984_vm0, %v980_v61, %v986_v7  ;;  %v1732_v61 = vld [vmem:[%s2447_s1 + $0x44] sm:$0xff]  }
 0x45e   :  { %v991_v8 = vpack.c.bf16 %v988_v31, %v987_v30 }
 0x460   :  { %1572 = vmatpush3.bf16.msra.mxu0 %v991_v8 }
 0x461   :  { %1585 = vmatprep.subr.bf16.mxu0 %v1775_v35 }
 0x463   :  { %1574 = vmatmul.mubr.msk.bf16.vlgmr.msra.gmra.mrb[8].mxu0 %vm1009_vm1, %v1729_v36  ;;  %v1735_v36 = vld [vmem:[%s2447_s1 + $0x1c] sm:$0xff]  }
 0x464   :  { %1589 = vmatprep.mubr.msk.bf16.mxu0 %vm1780_vm14, %v1775_v35  ;;  %1586 = vmatpush3.bf16.msra.mxu0 %v1730_v9 }
 0x465   :  { %1587 = vmatprep.subr.bf16.mxu0 %v1775_v35 }
 0x468   :  { %1588 = vmatpush3.bf16.msra.mxu0 %v1731_v22 }
 0x469   :  { %1593 = vmatprep.subr.bf16.mxu0 %v1775_v35 }
 0x536   :  { %v1047_v25 = vpop.f32.mrb[8].mxu0 }
 0x537   :  { %v1048_v38 = vadd.f32 %v1047_v25, %v997_v52  ;;  %v1575_v17 = vpop.f32.mrb[9].mxu0  ;;  %v1736_v52 = vld [vmem:[%s2447_s1 + $0x34] sm:$0xff]   ;;  %v1737_v25 = vld [vmem:[%s2447_s1 + $0x3c] sm:$0xff]  }
 0x538   :  { %v1050_v39 = vpop.f32.mrb[10].mxu0  ;;  %v1486_v17 = vld [vmem:[%s2451_s5] ss:$0 sm:$0xff] }
 0x539   :  { %vm1054_vm2 = vcmp.gt.f32.partialorder %v1048_v38, 0.0  ;;  %v1056_v11 = vmul.f32 0.1, %v1048_v38  ;;  %v1051_v26 = vadd.f32 %v1050_v39, %v1002_v29  ;;  %v1576_v37 = vpop.f32.mrb[11].mxu0 }
 0x53b   :  { %v1058_v41 = vsel %vm1054_vm2, %v1048_v38, %v1056_v11  ;;  %vm1055_vm3 = vcmp.gt.f32.partialorder %v1051_v26, 0.0  ;;  %v1057_v43 = vmul.f32 0.1, %v1051_v26 }
 0x53c   :  { %v1060_v44 = vadd.f32 %v1058_v41, %v987_v30  ;;  %v1733_v30 = vld [vmem:[%s2447_s1 + $0x4c] sm:$0xff]  }
 0x53d   :  { %v1059_v18 = vsel %vm1055_vm3, %v1051_v26, %v1057_v43 }
 0x53e   :  { %v1064_v45 = vmul.f32 0.1, %v1060_v44  ;;  %v1061_v47 = vadd.f32 %v1059_v18, %v988_v31  ;;  %vm1062_vm4 = vcmp.gt.f32.partialorder %v1060_v44, 0.0  ;;  %v1734_v31 = vld [vmem:[%s2447_s1 + $0x14] sm:$0xff]   ;;  %s1784_s1 = smov [#allocation2]  }
 0x53f   :  { %s1424_s5 = sshll.u32 %s1784_s1, 4  ;;  %s1425_s5 = int_to_ptr.vmem [resolvable:$true] %s1424_s5 }
 0x540   :  { %vm1063_vm5 = vcmp.gt.f32.partialorder %v1061_v47, 0.0  ;;  %v1065_v51 = vmul.f32 0.1, %v1061_v47  ;;  %v1066_v53 = vsel %vm1062_vm4, %v1060_v44, %v1064_v45  ;;  %s1742_s23 = scalar_lea.vmem %s1425_s5, 32  ;;  %p1747_p1 = scmp.lt.s32.totalorder %s1425_s5, %s1425_s5 }
 0x541   :  { %p1743_p0 = scmp.ne.s32.totalorder %s1425_s5, %s1742_s23  ;;  %p1748_p2 = scmp.lt.s32.totalorder %s1742_s23, %s1742_s23 }
 0x542   :  { %v1067_v54 = vsel %vm1063_vm5, %v1061_v47, %v1065_v51 }
 0x543   :  { %v1686_v55 = vpack.i.bf16 %v1067_v54, %v1066_v53  ;;  %v1109_v10 = vpack.c.bf16 %v1067_v54, %v1066_v53  ;;  %p1749_p3 = por %p1748_p2, %p1747_p1 }
 0x545   :  { %1687 = vrot.lane.b32.xlu1 %v1686_v55, %s1783_s26  ;;  %1682 = vrot.lane.b32.xlu0 %v1686_v55, %s1772_s0  ;;  %p1750_p4 = pnand %p1749_p3, %p1743_p0 }
 0x5b7   :  { %v1683_v49 = vpop.permute.xlu0 %1682  ;;  %v1688_v12 = vpop.permute.xlu1 %1687 }
 0x5b8   :  { %v1685_v60 = vunpack.i.h.bf16 %v1683_v49  ;;  %v1684_v62 = vunpack.i.l.bf16 %v1683_v49  ;;  %v1690_v33 = vunpack.i.h.bf16 %v1688_v12  ;;  %v1689_v2 = vunpack.i.l.bf16 %v1688_v12 }
 0x5ba   :  { %v1094_v50 = vsel %vm1093_vm7, %v1684_v62, %v1066_v53  ;;  %v1095_v34 = vsel %vm1093_vm7, %v1685_v60, %v1067_v54  ;;  %v1083_v14 = vsel %vm1081_vm9, %v1690_v33, %v1067_v54  ;;  %v1082_v42 = vsel %vm1081_vm9, %v1689_v2, %v1066_v53 }
 0x5bb   :  { %v1691_v63 = vpack.i.bf16 %v1095_v34, %v1094_v50  ;;  %v1103_v40 = vmax.f32 %v1067_v54, %v1083_v14  ;;  %v1102_v20 = vmax.f32 %v1066_v53, %v1082_v42 }
 0x5bd   :  { %1692 = vrot.lane.b32.xlu0 %v1691_v63, %s1783_s26 }
 0x62f   :  { %v1693_v32 = vpop.permute.xlu0 %1692 }
 0x630   :  { %v1695_v48 = vunpack.i.h.bf16 %v1693_v32  ;;  %v1694_v15 = vunpack.i.l.bf16 %v1693_v32 }
 0x632   :  { %v1101_v58 = vsel %vm1081_vm9, %v1695_v48, %v1095_v34  ;;  %v1100_v1 = vsel %vm1081_vm9, %v1694_v15, %v1094_v50 }
 0x633   :  { %v1105_v13 = vmax.f32 %v1095_v34, %v1101_v58  ;;  %v1104_v21 = vmax.f32 %v1094_v50, %v1100_v1 }
 0x635   :  { %v1107_v16 = vmax.f32 %v1103_v40, %v1105_v13  ;;  %v1106_v19 = vmax.f32 %v1102_v20, %v1104_v21 }
 0x637   :  { %v1108_v4 = vpack.c.bf16 %v1107_v16, %v1106_v19 }
 0x639   :  { %1578 = vmatpush3.bf16.xpose.msra.mxu1 %v1108_v4 }
 0x63a   :  { %1579 = vmatprep.subr.bf16.mxu1 %v1775_v35 }
 0x641   :  { %1580 = vmatpush3.bf16.xpose.msra.mxu1 %v1109_v10 }
 0x648   :  { %1582 = vmatmul.mubr.bf16.vlgmr.msra.gmra.mrb[12].mxu1 %v1110_v46 }
 0x71b   :  { %v1145_v23 = vpop.f32.mrb[12].mxu1 }
 0x71c   :  { %v1151_v28 = vpack.c.bf16 %v1145_v23, %v1145_v23  ;;  %v1583_v24 = vpop.f32.mrb[13].mxu1 }
 0x71d   :  { %v1148_v0 = vpop.f32.mrb[14].mxu1 }
 0x71e   :  { %v1161_v27 = vrot.slane %v1151_v28, 1  ;;  %v1584_v7 = vpop.f32.mrb[15].mxu1  ;;  %v1226_v8 = vrot.slane %v1151_v28, 3  ;;  %v1345_v38 = vrot.slane %v1151_v28, 2 }
 0x720   :  { %1590 = vmatmul.mubr.msk.bf16.vlgmr.msra.gmra.mrb[12].mxu0 %vm1174_vm10, %v1161_v27 }
 0x721   :  { %1594 = vmatpush3.bf16.msra.mxu0 %v1732_v61  ;;  %1597 = vmatprep.mubr.msk.bf16.mxu0 %vm1780_vm14, %v1775_v35 }
 0x722   :  { %1595 = vmatprep.subr.bf16.mxu0 %v1775_v35 }
 0x725   :  { %1596 = vmatpush3.bf16.msra.mxu0 %v1733_v30 }
 0x726   :  { %1601 = vmatprep.subr.bf16.mxu0 %v1775_v35 }
 0x72c   :  { %1598 = vmatmul.mubr.msk.bf16.vlgmr.msra.gmra.mrb[12].mxu0 %vm1174_vm10, %v1226_v8 }
 0x72d   :  { %1602 = vmatpush3.bf16.msra.mxu0 %v1734_v31  ;;  %1605 = vmatprep.mubr.msk.bf16.mxu0 %vm1780_vm14, %v1775_v35 }
 0x72e   :  { %1603 = vmatprep.subr.bf16.mxu0 %v1775_v35 }
 0x731   :  { %1604 = vmatpush3.bf16.msra.mxu0 %v1735_v36 }
 0x732   :  { %1609 = vmatprep.subr.bf16.mxu0 %v1775_v35 }
 0x738   :  { %1606 = vmatmul.mubr.msk.bf16.vlgmr.msra.gmra.mrb[12].mxu0 %vm1174_vm10, %v1151_v28 }
 0x739   :  { %1610 = vmatpush3.bf16.msra.mxu0 %v1736_v52  ;;  %1613 = vmatprep.mubr.msk.bf16.mxu0 %vm1780_vm14, %v1775_v35 }
 0x73a   :  { %1611 = vmatprep.subr.bf16.mxu0 %v1775_v35 }
 0x73d   :  { %1612 = vmatpush3.bf16.msra.mxu0 %v1737_v25 }
 0x744   :  { %1614 = vmatmul.mubr.msk.bf16.vlgmr.msra.gmra.mrb[12].mxu0 %vm1174_vm10, %v1345_v38 }
 0x817   :  { %v1395_v29 = vpop.f32.mrb[12].mxu0 }
 0x818   :  { %v1617_v39 = vadd.f32 %v1486_v17, %v1395_v29  ;;  %v1615_v11 = vpop.f32.mrb[13].mxu0 }
 0x819   :  { %v1398_v26 = vpop.f32.mrb[14].mxu0 }
 0x81a   :  { %v1403_v37 = vmul.f32 0.1, %v1617_v39  ;;  %v1616_v41 = vpop.f32.mrb[15].mxu0  ;;  %vm1402_vm11 = vcmp.gt.f32.partialorder %v1617_v39, 0.0 }
 0x81c   :  { %v1404_v43 = vsel %vm1402_vm11, %v1617_v39, %v1403_v37 }
 0x81d   :  { %v1406_v44 = vsel %vm1405_vm12, %v1404_v43, -inf }
 0x81e   :  { %1407 = vmax.xlane.f32.xlu1 %v1406_v44 }
 0x8ab   :  { %v1408_v35 = vpop.xlane.xlu1 %1407 }
 0x8ac   :  { %v1409_v18 = vsub.f32 %v1404_v43, %v1408_v35 }
 0x8ae   :  { %v1410_v45 = vmul.f32 1.442695, %v1409_v18 }
 0x8b0   :  { %1738 = vpow2.f32 %v1410_v45 }
 0x8ba   :  { %v1739_v47 = vpop.eup %1738 }
 0x8bb   :  { %v1412_v51 = vsel %vm1405_vm12, %v1739_v47, 0.0 }
 0x8bc   :  { %1413 = vadd.xlane.f32.xlu0 %v1412_v51 }
 0x949   :  { %v1414_v53 = vpop.xlane.xlu0 %1413 }
 0x94a   :  { %1740 = vrcp.f32 %v1414_v53 }
 0x954   :  { %v1741_v54 = vpop.eup %1740 }
 0x955   :  { %v1416_v55 = vmul.f32 %v1741_v54, %v1739_v47 }
 0x957   :  { %1417 = vst.msk [vmem:[#allocation2] sm:$0x3] %vm1405_vm12, %v1416_v55 }
 0x958   :  { %1753 = shalt.err (!%p1750_p4)
}
 0x959   :  { %s1754_s26 = scalar_lea.hbm %s2452_s6, 32 }
 0x95a   :  { %p1755_p5 = scmp.ne.s32.totalorder %s2452_s6, %s1754_s26  ;;  %p1758_p6 = scmp.lt.u32.totalorder %s1754_s26, %s2452_s6 }
 0x95c   :  { %p1760_p7 = pnand %p1758_p6, %p1755_p5 }
 0x95e   :  { %1763 = shalt.err (!%p1760_p7)
}
 0x95f   :  { %1427 = dma.vmem_to_hbm [thread:$0]  %s1425_s5, 32, %s2452_s6, [#allocation3]  }
 0x960   :  { %1764 = dma.done.wait [#allocation3], 32  }
 0x961   :  { %1765 = vsyncadd [#allocation3], 4294967264 }
 0x962   :  { %1431 = vsyncpa [#allocation3], 1 }

</bundles_post_ra>
